<compile_context>
chip_gen: v6e
topology: v6e:2x2x1
jax: 0.10.0
libtpu: 0.0.40
codegen_flags: <defaults>
</compile_context>

<pallas_src>
import numpy as np

import jax
import jax.numpy as jnp
from jax import lax
from jax.experimental import pallas as pl
from jax.experimental.pallas import tpu as pltpu


def _ceil_div(a, b):
    return -(-a // b)


def _round_up(a, b):
    return _ceil_div(a, b) * b


def _tile_dot(a_ref, b_ref):
    # a_ref: (tm, tk), b_ref: (tm, tk) -> (tm, tm); contracts the feature axis
    # of both operands (MXU-native trans-B matmul), so the wrapper never
    # materializes x.T in HBM.
    return lax.dot_general(
        a_ref[...], b_ref[...],
        dimension_numbers=(((1,), (1,)), ((), ())),
        preferred_element_type=jnp.float32)


def _row_sq_norm(t_ref):
    # f32 squared row norms of a (tm, tk) tile -> (tm, 1); lane reduction
    # rides the VPU/XLU slots under an MXU/HBM-bound step.
    t = t_ref[...].astype(jnp.float32)
    return jnp.sum(t * t, axis=1, keepdims=True)


def _make_gram_kernel(kernel_type, gamma, split_k):
    rbf = kernel_type != "linear"
    gamma = float(gamma)

    def _finalize_rbf(dot_f32, na_col, nrow, o_ref):
        sq = jnp.maximum(na_col + nrow - 2.0 * dot_f32, 0.0)  # clamp fp neg.
        o_ref[...] = jnp.exp(-gamma * sq).astype(o_ref.dtype)

    if not split_k:
        # Whole feature axis fits one VMEM panel (the common SVM case):
        # straight write to o_ref, no accumulator, no init/finalize branches.
        if rbf:
            def body(ti_ref, tj_ref, a_ref, b_ref, nrow_ref, o_ref):
                dot = _tile_dot(a_ref, b_ref)
                na = _row_sq_norm(a_ref)
                _finalize_rbf(dot, na, nrow_ref[...], o_ref)
        else:
            def body(ti_ref, tj_ref, a_ref, b_ref, o_ref):
                o_ref[...] = _tile_dot(a_ref, b_ref).astype(o_ref.dtype)
        return body

    # Large D: accumulate in an f32 VMEM scratch (out_dtype stays whatever the
    # caller asked for, e.g. bf16); finalize + cast at k == last.
    if rbf:
        def body(ti_ref, tj_ref, a_ref, b_ref, nrow_ref, o_ref,
                 acc_ref, na_ref):
            k = pl.program_id(1)

            @pl.when(k == 0)
            def _():
                acc_ref[...] = jnp.zeros_like(acc_ref)
                na_ref[...] = jnp.zeros_like(na_ref)

            acc_ref[...] += _tile_dot(a_ref, b_ref)
            na_ref[...] += _row_sq_norm(a_ref)

            @pl.when(k == pl.num_programs(1) - 1)
            def _():
                _finalize_rbf(acc_ref[...], na_ref[...], nrow_ref[...], o_ref)
    else:
        def body(ti_ref, tj_ref, a_ref, b_ref, o_ref, acc_ref):
            k = pl.program_id(1)

            @pl.when(k == 0)
            def _():
                acc_ref[...] = jnp.zeros_like(acc_ref)

            acc_ref[...] += _tile_dot(a_ref, b_ref)

            @pl.when(k == pl.num_programs(1) - 1)
            def _():
                o_ref[...] = acc_ref[...].astype(o_ref.dtype)
    return body


def _mirror_kernel(li_ref, lj_ref, src_ref, dst_ref):
    # Strict-lower block (li, lj) = transpose of upper block (lj, li).
    # Cast to f32 for the XLU transpose, then back to the output dtype.
    dst_ref[...] = src_ref[...].astype(jnp.float32).T.astype(dst_ref.dtype)


def _mirror_lower(gram, li, lj, tm, vmem_limit):
    """In-place tile-granular mirror of the upper triangle into the lower."""
    n_pad = gram.shape[0]
    mi = jnp.asarray(li, dtype=jnp.int32)
    mj = jnp.asarray(lj, dtype=jnp.int32)
    return pl.pallas_call(
        _mirror_kernel,
        out_shape=jax.ShapeDtypeStruct((n_pad, n_pad), gram.dtype),
        grid_spec=pltpu.PrefetchScalarGridSpec(
            num_scalar_prefetch=2,
            grid=(int(mi.shape[0]),),
            in_specs=[pl.BlockSpec((tm, tm), lambda p, r, c: (c[p], r[p]))],
            out_specs=pl.BlockSpec((tm, tm), lambda p, r, c: (r[p], c[p]))),
        # Alias the Gram buffer (operand index 2: after the two scalar-prefetch
        # tile lists) so upper tiles are read and only strict-lower tiles are
        # written: one N^2/2 read + N^2/2 write pass, no jnp.where / out.T.
        input_output_aliases={2: 0},
        compiler_params=pltpu.CompilerParams(
            dimension_semantics=("parallel",),
            vmem_limit_bytes=vmem_limit),
    )(mi, mj, gram)


def svm_gram(x, *, kernel="rbf", C=1.0, gamma=0.5,
             tile=1024, max_tk=2048, symmetric=None,
             mxu_dtype=jnp.bfloat16, out_dtype=jnp.float32):
    """SVM kernel (Gram) matrix of x computed with a Pallas TPU kernel.

    x: (N, D) float array.  Returns (N, N) out_dtype.
    C is accepted for API parity with the PyTorch module but is only consumed
    by the (untranslated) SMO solver, not by the Gram-matrix hot path.
    Pass mxu_dtype=jnp.float32 for ill-conditioned / un-standardized data.
    """
    del C
    if kernel not in ("linear", "rbf"):
        raise ValueError(f"unsupported kernel: {kernel!r}")
    if tile % 128 != 0 or max_tk % 128 != 0:
        raise ValueError("tile and max_tk must be multiples of 128")
    rbf = kernel == "rbf"
    N, D = x.shape
    out_dtype = jnp.dtype(out_dtype)

    # ---- tiling / zero padding (result is sliced back to (N, N)) ----------
    nt = _ceil_div(N, tile)                       # number of row tiles
    tm = _round_up(_ceil_div(N, nt), 128)         # even square output tiles
    n_pad = nt * tm

    d128 = _round_up(max(D, 1), 128)
    kt = max(1, _ceil_div(d128, max_tk))          # number of K chunks
    tk = _round_up(_ceil_div(max(D, 1), kt), 128)  # chunk width
    d_pad = kt * tk
    split_k = kt > 1

    if symmetric is None:
        # Symmetric traversal + mirror writes ~1.5*N^2 output bytes vs 1.0*N^2
        # for the full grid, so it only pays once MXU time dominates the output
        # stream.  Crossover D: ~1400 (v6e), ~620 (v7x), ~480 (v5e) for 4-byte
        # output, roughly half for 16-bit.  Use the most conservative chip.
        symmetric = D >= (1408 if out_dtype.itemsize >= 4 else 704)
    symmetric = bool(symmetric)

    # ---- inputs: cast to the MXU dtype before padding (no f32 padded copy) --
    xq = jnp.pad(jnp.asarray(x).astype(mxu_dtype),
                 ((0, n_pad - N), (0, d_pad - D)))

    operands = [xq, xq]
    in_specs = [
        pl.BlockSpec((tm, tk), lambda p, k, ti, tj: (ti[p], k)),   # rows i
        pl.BlockSpec((tm, tk), lambda p, k, ti, tj: (tj[p], k)),   # rows j
    ]
    if rbf:
        # Only the lane-oriented (1, n_pad) j-side norms are passed; i-side
        # norms are computed in-kernel from the A tile.
        norms_row = jnp.sum(jnp.square(xq.astype(jnp.float32)),
                            axis=1)[None, :]                        # (1, n_pad)
        operands.append(norms_row)
        in_specs.append(
            pl.BlockSpec((1, tm), lambda p, k, ti, tj: (0, tj[p])))

    # ---- tile list: upper triangle only when exploiting symmetry ----------
    if symmetric:
        ii, jj = np.triu_indices(nt)
    else:
        ii, jj = np.meshgrid(np.arange(nt), np.arange(nt), indexing="ij")
        ii, jj = ii.ravel(), jj.ravel()
    tile_i = jnp.asarray(ii, dtype=jnp.int32)
    tile_j = jnp.asarray(jj, dtype=jnp.int32)
    n_tiles = int(tile_i.shape[0])

    scratch = []
    if split_k:
        scratch.append(pltpu.VMEM((tm, tm), jnp.float32))     # f32 accumulator
        if rbf:
            scratch.append(pltpu.VMEM((tm, 1), jnp.float32))  # partial ||x_i||^2

    # ---- VMEM budget sized from the actual buffers, capped for v7x ---------
    isz = np.dtype(mxu_dtype).itemsize
    osz = out_dtype.itemsize
    est = (2 * 2 * tm * tk * isz        # A + B tiles, double-buffered
           + 2 * tm * tm * osz)         # output tile, double-buffered
    if rbf:
        est += 2 * 8 * tm * 4           # (1, tm) row-norm blocks (sublane-padded)
    if split_k:
        est += tm * tm * 4 + tm * 128 * 4   # f32 acc + padded (tm, 1) norms
    vmem_limit = int(min(max(est + est // 4 + (4 << 20), 32 << 20), 64 << 20))

    body = _make_gram_kernel(kernel, gamma, split_k)

    gram = pl.pallas_call(
        body,
        out_shape=jax.ShapeDtypeStruct((n_pad, n_pad), out_dtype),
        grid_spec=pltpu.PrefetchScalarGridSpec(
            num_scalar_prefetch=2,
            grid=(n_tiles, kt),
            in_specs=in_specs,
            out_specs=pl.BlockSpec((tm, tm),
                                   lambda p, k, ti, tj: (ti[p], tj[p])),
            scratch_shapes=scratch),
        compiler_params=pltpu.CompilerParams(
            # tile-list axis is embarrassingly parallel (distinct output
            # blocks) -> sharded across v7x's 2 TensorCores; k is a reduction.
            dimension_semantics=("parallel", "arbitrary"),
            vmem_limit_bytes=vmem_limit),
    )(tile_i, tile_j, *operands)

    if symmetric:
        # Fill the (never-written) strict-lower tiles by transposing the
        # computed upper tiles, in place.  Diagonal tiles are already symmetric.
        li, lj = np.tril_indices(nt, k=-1)
        if li.size:
            gram = _mirror_lower(gram, li, lj, tm, vmem_limit)
    return gram[:N, :N]


class SVM:
    """JAX mirror of the PyTorch SVM wrapper module."""

    def __init__(self, kernel, C, gamma):
        self.kernel = kernel
        self.C = C
        self.gamma = gamma

    def forward(self, x):
        # Stands in for libsvm.svm.svm_train's kernel-matrix computation.
        return svm_gram(x, kernel=self.kernel, C=self.C, gamma=self.gamma)

    __call__ = forward

    def predict(self, x):
        # TODO(synk): libsvm.svm.svm_predict needs support vectors / dual
        # coefficients from the untranslated SMO solver.
        raise NotImplementedError


if __name__ == "__main__":
    key = jax.random.PRNGKey(0)

    # Small, deliberately non-tile-aligned shapes: exercises zero padding, the
    # adaptive full-grid path, the symmetric (upper-tri + mirror) path, the
    # split-K scratch accumulator, and bf16 output.
    N, D = 300, 72
    x = jax.random.normal(key, (N, D), dtype=jnp.float32)
    gamma = 1.0 / D

    def ref_gram(xr, kind, g):
        # Reference uses the same bf16-rounded operands the kernel's MXU sees.
        xq = xr.astype(jnp.bfloat16).astype(jnp.float32)
        dots = jnp.dot(xq, xq.T, precision=jax.lax.Precision.HIGHEST)
        if kind == "linear":
            return dots
        nrm = jnp.sum(xq * xq, axis=1)
        sq = jnp.maximum(nrm[:, None] + nrm[None, :] - 2.0 * dots, 0.0)
        return jnp.exp(-g * sq)

    # 1) rbf, collapsed-K, single big tile, full-grid (auto non-symmetric).
    model = SVM(kernel="rbf", C=1.0, gamma=gamma)
    gram = model(x)
    jax.block_until_ready(gram)
    assert gram.shape == (N, N)
    assert jnp.allclose(gram, ref_gram(x, "rbf", gamma), atol=2e-4, rtol=2e-4)

    # 2) linear kernel (no norm operand), multi-tile full-grid path (nt > 1).
    gram_lin = svm_gram(x, kernel="linear", gamma=gamma, tile=128)
    jax.block_until_ready(gram_lin)
    assert jnp.allclose(gram_lin, ref_gram(x, "linear", gamma),
                        atol=1e-3, rtol=1e-3)

    # 3) symmetric traversal + in-place tile mirror pass, bf16 Gram output.
    gram_sym = svm_gram(x, kernel="rbf", gamma=gamma, tile=128,
                        symmetric=True, out_dtype=jnp.bfloat16)
    jax.block_until_ready(gram_sym)
    assert gram_sym.dtype == jnp.bfloat16
    assert jnp.allclose(gram_sym.astype(jnp.float32), ref_gram(x, "rbf", gamma),
                        atol=1e-2, rtol=1e-2)

    # 4) split-K fallback (feature dim wider than one K chunk), f32 scratch acc.
    N2, D2 = 256, 256
    x2 = jax.random.normal(jax.random.PRNGKey(1), (N2, D2), dtype=jnp.float32)
    gamma2 = 1.0 / D2
    gram2 = svm_gram(x2, kernel="rbf", gamma=gamma2, tile=128, max_tk=128)
    jax.block_until_ready(gram2)
    assert gram2.shape == (N2, N2)
    assert jnp.allclose(gram2, ref_gram(x2, "rbf", gamma2),
                        atol=2e-4, rtol=2e-4)

    print("KERNEL_OK")
</pallas_src>

<mosaic_0001>
module attributes {stable_mosaic.version = 11 : i64} {
  func.func @body(%arg0: i32, %arg1: i32, %arg2: memref<1xi32, #tpu.memory_space<smem>>, %arg3: memref<1xi32, #tpu.memory_space<smem>>, %arg4: memref<384x128xbf16, #tpu.memory_space<vmem>>, %arg5: memref<384x128xbf16, #tpu.memory_space<vmem>>, %arg6: memref<1x384xf32, #tpu.memory_space<vmem>>, %arg7: memref<384x384xf32, #tpu.memory_space<vmem>>) attributes {dimension_semantics = [#tpu.dimension_semantics<parallel>, #tpu.dimension_semantics<arbitrary>], iteration_bounds = array<i64: 1, 1>, scalar_prefetch = 2 : i64, scratch_operands = 0 : i64, tpu.core_type = #tpu.core_type<tc>, window_params = [{transform_indices = @transform_0, window_bounds = array<i64: 384, 128>}, {transform_indices = @transform_1, window_bounds = array<i64: 384, 128>}, {transform_indices = @transform_2, window_bounds = array<i64: 1, 384>}, {transform_indices = @transform_3, window_bounds = array<i64: 384, 384>}]} {
    %c0 = arith.constant 0 : index
    %c0_0 = arith.constant 0 : index
    %0 = vector.load %arg4[%c0, %c0_0] : memref<384x128xbf16, #tpu.memory_space<vmem>>, vector<384x128xbf16>
    %c0_1 = arith.constant 0 : index
    %c0_2 = arith.constant 0 : index
    %1 = vector.load %arg5[%c0_1, %c0_2] : memref<384x128xbf16, #tpu.memory_space<vmem>>, vector<384x128xbf16>
    %cst = arith.constant dense<0.000000e+00> : vector<384x384xf32>
    %2 = tpu.matmul %0, %1, %cst {dimension_numbers = #tpu.dot_dimension_numbers<[1], [1], [0], [0], [0, 0, 1, 0], [], []>} : vector<384x128xbf16>, vector<384x128xbf16>, vector<384x384xf32> -> vector<384x384xf32>
    %c0_3 = arith.constant 0 : index
    %c0_4 = arith.constant 0 : index
    %3 = vector.load %arg4[%c0_3, %c0_4] : memref<384x128xbf16, #tpu.memory_space<vmem>>, vector<384x128xbf16>
    %4 = arith.extf %3 : vector<384x128xbf16> to vector<384x128xf32>
    %5 = arith.mulf %4, %4 : vector<384x128xf32>
    %cst_5 = arith.constant dense<0.000000e+00> : vector<384xf32>
    %6 = vector.multi_reduction <add>, %5, %cst_5 [1] : vector<384x128xf32> to vector<384xf32>
    %7 = vector.shape_cast %6 : vector<384xf32> to vector<384x1xf32>
    %c0_6 = arith.constant 0 : index
    %c0_7 = arith.constant 0 : index
    %8 = vector.load %arg6[%c0_6, %c0_7] : memref<1x384xf32, #tpu.memory_space<vmem>>, vector<1x384xf32>
    %9 = vector.broadcast %7 : vector<384x1xf32> to vector<384x384xf32>
    %10 = vector.broadcast %8 : vector<1x384xf32> to vector<384x384xf32>
    %11 = arith.addf %9, %10 : vector<384x384xf32>
    %cst_8 = arith.constant 2.000000e+00 : f32
    %12 = vector.broadcast %cst_8 : f32 to vector<384x384xf32>
    %13 = arith.mulf %12, %2 : vector<384x384xf32>
    %14 = arith.subf %11, %13 : vector<384x384xf32>
    %cst_9 = arith.constant 0.000000e+00 : f32
    %15 = vector.broadcast %cst_9 : f32 to vector<384x384xf32>
    %16 = arith.maximumf %14, %15 : vector<384x384xf32>
    %cst_10 = arith.constant -0.013888889 : f32
    %17 = vector.broadcast %cst_10 : f32 to vector<384x384xf32>
    %18 = arith.mulf %17, %16 : vector<384x384xf32>
    %19 = math.exp %18 : vector<384x384xf32>
    %c0_11 = arith.constant 0 : index
    %c0_12 = arith.constant 0 : index
    %20 = vector.load %arg7[%c0_11, %c0_12] : memref<384x384xf32, #tpu.memory_space<vmem>>, vector<384x384xf32>
    tpu.vector_store %arg7[%c0_11, %c0_12], %19 {strides = array<i32>} : memref<384x384xf32, #tpu.memory_space<vmem>>, vector<384x384xf32>,
    return
  }
  func.func @transform_0(%arg0: i32, %arg1: i32, %arg2: memref<1xi32, #tpu.memory_space<smem>>, %arg3: memref<1xi32, #tpu.memory_space<smem>>) -> (i32, i32) {
    %0 = arith.index_cast %arg0 : i32 to index
    %1 = memref.load %arg2[%0] : memref<1xi32, #tpu.memory_space<smem>>
    %c0_i32 = arith.constant 0 : i32
    return %1, %arg1 : i32, i32
  }
  func.func @transform_1(%arg0: i32, %arg1: i32, %arg2: memref<1xi32, #tpu.memory_space<smem>>, %arg3: memref<1xi32, #tpu.memory_space<smem>>) -> (i32, i32) {
    %0 = arith.index_cast %arg0 : i32 to index
    %1 = memref.load %arg3[%0] : memref<1xi32, #tpu.memory_space<smem>>
    %c0_i32 = arith.constant 0 : i32
    return %1, %arg1 : i32, i32
  }
  func.func @transform_2(%arg0: i32, %arg1: i32, %arg2: memref<1xi32, #tpu.memory_space<smem>>, %arg3: memref<1xi32, #tpu.memory_space<smem>>) -> (i32, i32) {
    %0 = arith.index_cast %arg0 : i32 to index
    %1 = memref.load %arg3[%0] : memref<1xi32, #tpu.memory_space<smem>>
    %c0_i32 = arith.constant 0 : i32
    %c0_i32_0 = arith.constant 0 : i32
    return %c0_i32, %1 : i32, i32
  }
  func.func @transform_3(%arg0: i32, %arg1: i32, %arg2: memref<1xi32, #tpu.memory_space<smem>>, %arg3: memref<1xi32, #tpu.memory_space<smem>>) -> (i32, i32) {
    %0 = arith.index_cast %arg0 : i32 to index
    %1 = memref.load %arg2[%0] : memref<1xi32, #tpu.memory_space<smem>>
    %2 = arith.index_cast %arg0 : i32 to index
    %3 = memref.load %arg3[%2] : memref<1xi32, #tpu.memory_space<smem>>
    %c0_i32 = arith.constant 0 : i32
    return %1, %3 : i32, i32
  }
}

</mosaic_0001>

<bundles_post_ra>
// kernel: tpu_custom_call.1
= control target key start
LH: loop header
LB: loop body
LE: loop exit
PB: predicated region body
PF: predicated region fallthrough
CT: control target
= control target key end

     0   :  { %12 = vsyncpa [#allocation6], 0  ;;  %s4020_s0 = inlined_call_operand.<no memory space> [shape: s32[1], index: 0, kind: input, shape index: {}]   ;;  %s4021_s1 = inlined_call_operand.<no memory space> [shape: s32[1], index: 1, kind: input, shape index: {}]   ;;  %s4022_s2 = inlined_call_operand.hbm [shape: bf16[384,128], index: 2, kind: input, shape index: {}]   ;;  %s4023_s3 = inlined_call_operand.hbm [shape: bf16[384,128], index: 3, kind: input, shape index: {}]   ;;  %s4024_s4 = inlined_call_operand.vmem [shape: f32[1,384], index: 4, kind: input, shape index: {}]   ;;  %s4025_s5 = inlined_call_operand.hbm [shape: f32[384,384], index: 5, kind: output, shape index: {}]  }
   0x1   :  { %13 = vsyncpa [#allocation9], 0 }
   0x2   :  { %14 = vsyncpa [#allocation7], 0  ;;  %s2415_s20 = smul.u32 3072, %s4020_s0  ;;  %s3018_s21 = smov [#allocation5]  }
   0x3   :  { %s24_s22 = sshll.u32 %s3018_s21, 4  ;;  %s2416_s28 = smul.u32 3072, %s4021_s1  ;;  %s25_s22 = int_to_ptr.vmem [resolvable:$true] %s24_s22 }
   0x4   :  { %s23_s25 = scalar_lea.hbm %s4022_s2, %s2415_s20  ;;  %s2948_s7 = scalar_lea.hbm %s4022_s2, 3072 }
   0x5   :  { %s2946_s29 = scalar_lea.hbm %s23_s25, 3072  ;;  %p2949_p1 = scmp.lt.s32.totalorder %s23_s25, %s4022_s2 }
   0x6   :  { %p2947_p0 = scmp.ne.s32.totalorder %s23_s25, %s2946_s29  ;;  %p2950_p2 = scmp.lt.s32.totalorder %s2948_s7, %s2946_s29 }
   0x8   :  { %p2951_p3 = por %p2950_p2, %p2949_p1 }
   0xa   :  { %p2952_p4 = pnand %p2951_p3, %p2947_p0 }
   0xc   :  { %2955 = shalt.err (!%p2952_p4)
}
   0xd   :  { %s2956_s10 = scalar_lea.vmem %s25_s22, 3072  ;;  %p2961_p6 = scmp.lt.s32.totalorder %s25_s22, %s25_s22 }
   0xe   :  { %p2957_p5 = scmp.ne.s32.totalorder %s25_s22, %s2956_s10  ;;  %p2962_p7 = scmp.lt.s32.totalorder %s2956_s10, %s2956_s10 }
  0x10   :  { %p2963_p8 = por %p2962_p7, %p2961_p6 }
  0x12   :  { %p2964_p9 = pnand %p2963_p8, %p2957_p5 }
  0x14   :  { %2967 = shalt.err (!%p2964_p9)
}
  0x15   :  { %s3019_s11 = smov 64   ;;  %s3020_s12 = smov 4  }
  0x16   :  { %30 = dma.hbm_to_vmem [thread:$0]  %s23_s25, 3072, %s25_s22, [#allocation6], %s3019_s11, %s3019_s11, %s3020_s12  }
  0x17   :  { %s39_s15 = scalar_lea.hbm %s4023_s3, %s2416_s28  ;;  %s3021_s16 = smov [#allocation8]  }
  0x18   :  { %s40_s2 = sshll.u32 %s3021_s16, 4  ;;  %s2968_s17 = scalar_lea.hbm %s39_s15, 3072  ;;  %s41_s2 = int_to_ptr.vmem [resolvable:$true] %s40_s2 }
  0x19   :  { %p2969_p10 = scmp.ne.s32.totalorder %s39_s15, %s2968_s17  ;;  %s2970_s20 = scalar_lea.hbm %s4023_s3, 3072 }
  0x1a   :  { %p2971_p11 = scmp.lt.s32.totalorder %s39_s15, %s4023_s3  ;;  %p2972_p12 = scmp.lt.s32.totalorder %s2970_s20, %s2968_s17 }
  0x1c   :  { %p2973_p13 = por %p2972_p12, %p2971_p11 }
  0x1e   :  { %p2974_p0 = pnand %p2973_p13, %p2969_p10 }
  0x20   :  { %2977 = shalt.err (!%p2974_p0)
}
  0x21   :  { %s2978_s22 = scalar_lea.vmem %s41_s2, 3072  ;;  %p2983_p2 = scmp.lt.s32.totalorder %s41_s2, %s41_s2 }
  0x22   :  { %p2979_p1 = scmp.ne.s32.totalorder %s41_s2, %s2978_s22  ;;  %p2984_p3 = scmp.lt.s32.totalorder %s2978_s22, %s2978_s22 }
  0x24   :  { %p2985_p4 = por %p2984_p3, %p2983_p2 }
  0x26   :  { %p2986_p5 = pnand %p2985_p4, %p2979_p1 }
  0x28   :  { %2989 = shalt.err (!%p2986_p5)
}
  0x29   :  { %46 = dma.hbm_to_vmem [thread:$0]  %s39_s15, 3072, %s41_s2, [#allocation9], %s3019_s11, %s3019_s11, %s3020_s12  }
  0x2a   :  { %3012 = dma.done.wait [#allocation6], 3072  }
  0x2b   :  { %3013 = vsyncadd [#allocation6], 4294964224 }
  0x2c   :  { %3014 = dma.done.wait [#allocation9], 3072  }
  0x2d   :  { %3015 = vsyncadd [#allocation9], 4294964224  ;;  %v2586_v0 = vld [vmem:[#allocation8 + $0x78] sm:$0xff]   ;;  %v2588_v2 = vld [vmem:[#allocation8 + $0x70] sm:$0xff]   ;;  %s3251_s25 = smul.u32 3, %s4021_s1  ;;  %s3022_s8 = smov [#allocation10]  }
  0x2e   :  { %v2587_v1 = vld [vmem:[#allocation8 + $0x38] sm:$0xff]   ;;  %2417 = vmatprep.subr.bf16.mxu0 %v2586_v0  ;;  %v2589_v3 = vld [vmem:[#allocation8 + $0x30] sm:$0xff]   ;;  %v2590_v4 = vld [vmem:[#allocation8 + $0x68] sm:$0xff]   ;;  %s2578_s30 = smul.u32 144, %s4020_s0  ;;  %s2339_s9 = sshll.u32 %s3022_s8, 4  ;;  %s2340_s9 = int_to_ptr.vmem [resolvable:$true] %s2339_s9 }
  0x2f   :  { %2418 = vmatpush3.bf16.xpose.msra.mxu0 %v2587_v1  ;;  %v2591_v5 = vld [vmem:[#allocation8 + $0x28] sm:$0xff]   ;;  %v2592_v6 = vld [vmem:[#allocation8 + $0x60] sm:$0xff]   ;;  %v2606_v10 = vld [vmem:[#allocation8 + $0xb8] sm:$0xff]   ;;  %p73_p6 = scmp.lt.s32.totalorder %s3251_s25, 2  ;;  %s2990_s12 = scalar_lea.vmem %s2340_s9, 18432 }
  0x30   :  { %2419 = vmatprep.subr.bf16.mxu0 %v2588_v2  ;;  %v3079_v7 = vld [vmem:[#allocation5] sm:$0xff]   ;;  %v3081_v8 = vld [vmem:[#allocation5 + $0x8] sm:$0xff]   ;;  %v2608_v14 = vld [vmem:[#allocation8 + $0xb0] sm:$0xff]   ;;  %2513 = vmatprep.subr.bf16.mxu1 %v2606_v10  ;;  %s2336_s6 = sadd.s32 %s2578_s30, %s3251_s25  ;;  %p2991_p7 = scmp.ne.s32.totalorder %s2340_s9, %s2990_s12 }
  0x31   :  { %v965_v9 = vunpack.c.l.bf16 %v3079_v7  ;;  %v966_v11 = vunpack.c.h.bf16 %v3079_v7  ;;  %v967_v12 = vunpack.c.l.bf16 %v3081_v8  ;;  %v968_v13 = vunpack.c.h.bf16 %v3081_v8  ;;  %2433 = vmatprep.mubr.bf16.mxu0 %v3079_v7  ;;  %v3088_v16 = vld [vmem:[#allocation5 + $0x10] sm:$0xff]   ;;  %2514 = vmatpush3.bf16.xpose.msra.mxu1 %v2606_v10  ;;  %v2593_v22 = vld [vmem:[#allocation8 + $0x20] sm:$0xff]   ;;  %v2594_v23 = vld [vmem:[#allocation8 + $0x58] sm:$0xff]   ;;  %s74_s26 = scalar_select %p73_p6, %s3251_s25, 2 }
  0x32   :  { %v969_v19 = vunpack.c.l.bf16 %v3088_v16  ;;  %2515 = vmatprep.subr.bf16.mxu1 %v2608_v14  ;;  %v970_v21 = vunpack.c.h.bf16 %v3088_v16  ;;  %2529 = vmatprep.mubr.bf16.mxu1 %v3079_v7  ;;  %v3093_v24 = vld [vmem:[#allocation5 + $0x18] sm:$0xff]   ;;  %v2610_v27 = vld [vmem:[#allocation8 + $0xa8] sm:$0xff]   ;;  %v3097_v30 = vld [vmem:[#allocation5 + $0x20] sm:$0xff]   ;;  %s2414_s7 = sshll.u32 %s2336_s6, 7  ;;  %p2995_p8 = scmp.lt.s32.totalorder %s2340_s9, %s2340_s9 }
  0x33   :  { %v1013_v15 = vmul.f32 %v965_v9, %v965_v9  ;;  %v1015_v17 = vmul.f32 %v967_v12, %v967_v12  ;;  %v1014_v18 = vmul.f32 %v966_v11, %v966_v11  ;;  %v1016_v20 = vmul.f32 %v968_v13, %v968_v13  ;;  %v2595_v35 = vld [vmem:[#allocation8 + $0x18] sm:$0xff]   ;;  %v2596_v36 = vld [vmem:[#allocation8 + $0x50] sm:$0xff]   ;;  %v3101_v37 = vld [vmem:[#allocation5 + $0x28] sm:$0xff]   ;;  %s75_s28 = scalar_lea.vmem %s4024_s4, %s74_s26  ;;  %s2338_s0 = scalar_lea.hbm %s4025_s5, %s2414_s7 }
  0x34   :  { %v1017_v25 = vmul.f32 %v969_v19, %v969_v19  ;;  %v971_v26 = vunpack.c.l.bf16 %v3093_v24  ;;  %v1018_v28 = vmul.f32 %v970_v21, %v970_v21  ;;  %v972_v29 = vunpack.c.h.bf16 %v3093_v24  ;;  %v2612_v40 = vld [vmem:[#allocation8 + $0xa0] sm:$0xff]   ;;  %v3105_v43 = vld [vmem:[#allocation5 + $0x30] sm:$0xff]   ;;  %v2598_v48 = vld [vmem:[#allocation8 + $0x48] sm:$0xff]   ;;  %p2996_p9 = scmp.lt.s32.totalorder %s2990_s12, %s2990_s12 }
  0x35   :  { %1061 = vadd.xlane.f32.xlu0 %v1013_v15  ;;  %1065 = vadd.xlane.f32.xlu1 %v1015_v17  ;;  %v973_v32 = vunpack.c.l.bf16 %v3097_v30  ;;  %v974_v34 = vunpack.c.h.bf16 %v3097_v30  ;;  %v975_v39 = vunpack.c.l.bf16 %v3101_v37  ;;  %v976_v42 = vunpack.c.h.bf16 %v3101_v37  ;;  %v2597_v47 = vld [vmem:[#allocation8 + $0x10] sm:$0xff]   ;;  %v3108_v49 = vld [vmem:[#allocation5 + $0x38] sm:$0xff]   ;;  %v2599_v56 = vld [vmem:[#allocation8 + $0x8] sm:$0xff]  }
  0x36   :  { %v1019_v31 = vmul.f32 %v971_v26, %v971_v26  ;;  %v1020_v33 = vmul.f32 %v972_v29, %v972_v29  ;;  %v977_v45 = vunpack.c.l.bf16 %v3105_v43  ;;  %v978_v51 = vunpack.c.h.bf16 %v3105_v43  ;;  %v2614_v52 = vld [vmem:[#allocation8 + $0x98] sm:$0xff]   ;;  %v2600_v57 = vld [vmem:[#allocation8 + $0x40] sm:$0xff]   ;;  %v2616_v60 = vld [vmem:[#allocation8 + $0x90] sm:$0xff]   ;;  %p2997_p10 = por %p2996_p9, %p2995_p8 }
  0x37   :  { %2420 = vmatpush3.bf16.xpose.msra.mxu0 %v2589_v3  ;;  %v1021_v38 = vmul.f32 %v973_v32, %v973_v32  ;;  %v1022_v41 = vmul.f32 %v974_v34, %v974_v34  ;;  %v1023_v44 = vmul.f32 %v975_v39, %v975_v39  ;;  %v1024_v46 = vmul.f32 %v976_v42, %v976_v42  ;;  %v3112_v58 = vld [vmem:[#allocation5 + $0x40] sm:$0xff]   ;;  %v3116_v1 = vld [vmem:[#allocation5 + $0x48] sm:$0xff]   ;;  %v3120_v9 = vld [vmem:[#allocation5 + $0x50] sm:$0xff]  }
  0x38   :  { %2421 = vmatprep.subr.bf16.mxu0 %v2590_v4  ;;  %v1025_v50 = vmul.f32 %v977_v45, %v977_v45  ;;  %v979_v53 = vunpack.c.l.bf16 %v3108_v49  ;;  %v1026_v54 = vmul.f32 %v978_v51, %v978_v51  ;;  %v980_v59 = vunpack.c.h.bf16 %v3108_v49  ;;  %v2601_v0 = vld [vmem:[#allocation8] sm:$0xff]   ;;  %v2618_v3 = vld [vmem:[#allocation8 + $0x88] sm:$0xff]   ;;  %v3126_v15 = vld [vmem:[#allocation5 + $0x58] sm:$0xff]   ;;  %p2998_p11 = pnand %p2997_p10, %p2991_p7 }
  0x39   :  { %1063 = vadd.xlane.f32.xlu0 %v1014_v18  ;;  %1067 = vadd.xlane.f32.xlu1 %v1016_v20  ;;  %v981_v61 = vunpack.c.l.bf16 %v3112_v58  ;;  %v982_v2 = vunpack.c.h.bf16 %v3112_v58  ;;  %v983_v4 = vunpack.c.l.bf16 %v3116_v1  ;;  %v984_v10 = vunpack.c.h.bf16 %v3116_v1  ;;  %v2620_v11 = vld [vmem:[#allocation8 + $0x80] sm:$0xff]   ;;  %v3140_v26 = vld [vmem:[#allocation5 + $0x68] sm:$0xff]  }
  0x3a   :  { %2516 = vmatpush3.bf16.xpose.msra.mxu1 %v2608_v14  ;;  %v1027_v55 = vmul.f32 %v979_v53, %v979_v53  ;;  %v1028_v62 = vmul.f32 %v980_v59, %v980_v59  ;;  %v985_v12 = vunpack.c.l.bf16 %v3120_v9  ;;  %v986_v17 = vunpack.c.h.bf16 %v3120_v9  ;;  %v3132_v20 = vld [vmem:[#allocation5 + $0x60] sm:$0xff]  }
  0x3b   :  { %2517 = vmatprep.subr.bf16.mxu1 %v2610_v27  ;;  %v1029_v63 = vmul.f32 %v981_v61, %v981_v61  ;;  %v1032_v13 = vmul.f32 %v984_v10, %v984_v10  ;;  %v987_v18 = vunpack.c.l.bf16 %v3126_v15  ;;  %v988_v21 = vunpack.c.h.bf16 %v3126_v15  ;;  %v3164_v39 = vld [vmem:[#allocation5 + $0x80] sm:$0xff]  }
  0x3c   :  { %v1033_v14 = vmul.f32 %v985_v12, %v985_v12  ;;  %v998_v45 = vunpack.c.h.bf16 %v3164_v39 }
  0x3d   :  { %1069 = vadd.xlane.f32.xlu0 %v1017_v25  ;;  %1071 = vadd.xlane.f32.xlu1 %v1018_v28  ;;  %v1035_v19 = vmul.f32 %v987_v18, %v987_v18  ;;  %v991_v28 = vunpack.c.l.bf16 %v3140_v26 }
  0x3f   :  { %2422 = vmatpush3.bf16.xpose.msra.mxu0 %v2591_v5  ;;  %v1030_v5 = vmul.f32 %v982_v2, %v982_v2 }
  0x40   :  { %2423 = vmatprep.subr.bf16.mxu0 %v2592_v6  ;;  %v1031_v6 = vmul.f32 %v983_v4, %v983_v4 }
  0x41   :  { %1073 = vadd.xlane.f32.xlu0 %v1019_v31  ;;  %1075 = vadd.xlane.f32.xlu1 %v1020_v33  ;;  %v1039_v31 = vmul.f32 %v991_v28, %v991_v28 }
  0x42   :  { %2518 = vmatpush3.bf16.xpose.msra.mxu1 %v2610_v27  ;;  %v990_v27 = vunpack.c.h.bf16 %v3132_v20 }
  0x43   :  { %2519 = vmatprep.subr.bf16.mxu1 %v2612_v40 }
  0x44   :  { %v1038_v29 = vmul.f32 %v990_v27, %v990_v27 }
  0x45   :  { %1077 = vadd.xlane.f32.xlu0 %v1021_v38  ;;  %1079 = vadd.xlane.f32.xlu1 %v1022_v41 }
  0x47   :  { %2424 = vmatpush3.bf16.xpose.msra.mxu0 %v2593_v22  ;;  %v989_v22 = vunpack.c.l.bf16 %v3132_v20 }
  0x48   :  { %2425 = vmatprep.subr.bf16.mxu0 %v2594_v23  ;;  %v1036_v23 = vmul.f32 %v988_v21, %v988_v21 }
  0x49   :  { %1081 = vadd.xlane.f32.xlu0 %v1023_v44  ;;  %1083 = vadd.xlane.f32.xlu1 %v1024_v46  ;;  %v1037_v25 = vmul.f32 %v989_v22, %v989_v22  ;;  %v3172_v44 = vld [vmem:[#allocation5 + $0x88] sm:$0xff]   ;;  %v1046_v46 = vmul.f32 %v998_v45, %v998_v45 }
  0x4a   :  { %2520 = vmatpush3.bf16.xpose.msra.mxu1 %v2612_v40 }
  0x4b   :  { %2521 = vmatprep.subr.bf16.mxu1 %v2614_v52 }
  0x4d   :  { %1085 = vadd.xlane.f32.xlu0 %v1025_v50  ;;  %1087 = vadd.xlane.f32.xlu1 %v1026_v54 }
  0x4f   :  { %2426 = vmatpush3.bf16.xpose.msra.mxu0 %v2595_v35 }
  0x50   :  { %2427 = vmatprep.subr.bf16.mxu0 %v2596_v36 }
  0x51   :  { %1089 = vadd.xlane.f32.xlu0 %v1027_v55  ;;  %1091 = vadd.xlane.f32.xlu1 %v1028_v62  ;;  %v3192_v55 = vld [vmem:[#allocation5 + $0x98] sm:$0xff]  }
  0x52   :  { %2522 = vmatpush3.bf16.xpose.msra.mxu1 %v2614_v52 }
  0x53   :  { %2523 = vmatprep.subr.bf16.mxu1 %v2616_v60 }
  0x55   :  { %1093 = vadd.xlane.f32.xlu0 %v1029_v63  ;;  %1095 = vadd.xlane.f32.xlu1 %v1030_v5 }
  0x57   :  { %2428 = vmatpush3.bf16.xpose.msra.mxu0 %v2597_v47 }
  0x58   :  { %2429 = vmatprep.subr.bf16.mxu0 %v2598_v48  ;;  %v1000_v48 = vunpack.c.h.bf16 %v3172_v44 }
  0x59   :  { %1097 = vadd.xlane.f32.xlu0 %v1031_v6  ;;  %1099 = vadd.xlane.f32.xlu1 %v1032_v13 }
  0x5a   :  { %2524 = vmatpush3.bf16.xpose.msra.mxu1 %v2616_v60  ;;  %v1048_v50 = vmul.f32 %v1000_v48, %v1000_v48  ;;  %v3200_v60 = vld [vmem:[#allocation5 + $0xa0] sm:$0xff]  }
  0x5b   :  { %2525 = vmatprep.subr.bf16.mxu1 %v2618_v3  ;;  %v1005_v61 = vunpack.c.l.bf16 %v3200_v60  ;;  %v1006_v63 = vunpack.c.h.bf16 %v3200_v60 }
  0x5d   :  { %1101 = vadd.xlane.f32.xlu0 %v1033_v14  ;;  %v1053_v62 = vmul.f32 %v1005_v61, %v1005_v61 }
  0x5f   :  { %2430 = vmatpush3.bf16.xpose.msra.mxu0 %v2599_v56  ;;  %v1003_v56 = vunpack.c.l.bf16 %v3192_v55 }
  0x60   :  { %2431 = vmatprep.subr.bf16.mxu0 %v2600_v57 }
  0x61   :  { %1105 = vadd.xlane.f32.xlu0 %v1035_v19  ;;  %v1051_v57 = vmul.f32 %v1003_v56, %v1003_v56 }
  0x62   :  { %2526 = vmatpush3.bf16.xpose.msra.mxu1 %v2618_v3  ;;  %v3212_v3 = vld [vmem:[#allocation5 + $0xb0] sm:$0xff]  }
  0x63   :  { %2527 = vmatprep.subr.bf16.mxu1 %v2620_v11  ;;  %v1009_v10 = vunpack.c.l.bf16 %v3212_v3  ;;  %v1010_v12 = vunpack.c.h.bf16 %v3212_v3 }
  0x65   :  { %1109 = vadd.xlane.f32.xlu0 %v1037_v25  ;;  %v1058_v13 = vmul.f32 %v1010_v12, %v1010_v12 }
  0x67   :  { %2432 = vmatpush3.bf16.xpose.msra.mxu0 %v2601_v0  ;;  %v1054_v0 = vmul.f32 %v1006_v63, %v1006_v63 }
  0x69   :  { %1113 = vadd.xlane.f32.xlu0 %v1039_v31 }
  0x6a   :  { %2528 = vmatpush3.bf16.xpose.msra.mxu1 %v2620_v11  ;;  %v1057_v11 = vmul.f32 %v1009_v10, %v1009_v10 }
  0x6e   :  { %2434 = vmatmul.mubr.bf16.vlgmr.msra.gmra.mxu0 %v3079_v7  ;;  %v1034_v7 = vmul.f32 %v986_v17, %v986_v17 }
  0x6f   :  { %2435 = vmatprep.mubr.bf16.mxu0 %v3081_v8 }
  0x70   :  { %1103 = vadd.xlane.f32.xlu1 %v1034_v7 }
  0x71   :  { %2530 = vmatmul.mubr.bf16.vlgmr.msra.gmra.mxu1 %v3081_v8 }
  0x72   :  { %2533 = vmatprep.mubr.bf16.mxu1 %v3088_v16 }
  0x74   :  { %1107 = vadd.xlane.f32.xlu1 %v1036_v23 }
  0x76   :  { %2436 = vmatmul.mubr.bf16.gmra.mxu0 %v3081_v8  ;;  %v3148_v8 = vld [vmem:[#allocation5 + $0x70] sm:$0xff]  }
  0x77   :  { %2437 = vmatprep.mubr.bf16.mxu0 %v3088_v16  ;;  %v993_v32 = vunpack.c.l.bf16 %v3148_v8  ;;  %v994_v35 = vunpack.c.h.bf16 %v3148_v8 }
  0x78   :  { %1111 = vadd.xlane.f32.xlu1 %v1038_v29 }
  0x79   :  { %2534 = vmatmul.mubr.bf16.gmra.mxu1 %v3093_v24  ;;  %v1041_v34 = vmul.f32 %v993_v32, %v993_v32  ;;  %v1042_v36 = vmul.f32 %v994_v35, %v994_v35 }
  0x7a   :  { %2537 = vmatprep.mubr.bf16.mxu1 %v3097_v30 }
  0x7b   :  { %1117 = vadd.xlane.f32.xlu0 %v1041_v34 }
  0x7e   :  { %2438 = vmatmul.mubr.bf16.gmra.mxu0 %v3088_v16  ;;  %v992_v16 = vunpack.c.h.bf16 %v3140_v26 }
  0x7f   :  { %2439 = vmatprep.mubr.bf16.mxu0 %v3093_v24 }
  0x80   :  { %v1040_v33 = vmul.f32 %v992_v16, %v992_v16  ;;  %v1159_v16 = vlaneseq }
  0x81   :  { %2538 = vmatmul.mubr.bf16.gmra.mxu1 %v3101_v37 }
  0x82   :  { %2541 = vmatprep.mubr.bf16.mxu1 %v3105_v43  ;;  %1115 = vadd.xlane.f32.xlu1 %v1040_v33  ;;  %v1160_v34 = vshrl.u32 %v1159_v16, 7 }
  0x86   :  { %2440 = vmatmul.mubr.bf16.gmra.mxu0 %v3093_v24  ;;  %v3156_v24 = vld [vmem:[#allocation5 + $0x78] sm:$0xff]   ;;  %1119 = vadd.xlane.f32.xlu1 %v1042_v36  ;;  %v1165_v36 = vsub.s32 1, %v1160_v34 }
  0x87   :  { %2441 = vmatprep.mubr.bf16.mxu0 %v3097_v30  ;;  %v996_v40 = vunpack.c.h.bf16 %v3156_v24 }
  0x89   :  { %2542 = vmatmul.mubr.bf16.gmra.mxu1 %v3108_v49  ;;  %v1044_v41 = vmul.f32 %v996_v40, %v996_v40 }
  0x8a   :  { %2545 = vmatprep.mubr.bf16.mxu1 %v3112_v58 }
  0x8b   :  { %1123 = vadd.xlane.f32.xlu1 %v1044_v41 }
  0x8e   :  { %2442 = vmatmul.mubr.bf16.gmra.mxu0 %v3097_v30  ;;  %v995_v30 = vunpack.c.l.bf16 %v3156_v24 }
  0x8f   :  { %2443 = vmatprep.mubr.bf16.mxu0 %v3101_v37  ;;  %1127 = vadd.xlane.f32.xlu1 %v1046_v46 }
  0x90   :  { %v1043_v38 = vmul.f32 %v995_v30, %v995_v30  ;;  %v1161_v30 = vsub.s32 0, %v1160_v34 }
  0x91   :  { %2546 = vmatmul.mubr.bf16.gmra.mxu1 %v3116_v1 }
  0x92   :  { %1121 = vadd.xlane.f32.xlu0 %v1043_v38  ;;  %2549 = vmatprep.mubr.bf16.mxu1 %v3120_v9  ;;  %v1169_v38 = vsub.s32 2, %v1160_v34 }
  0x93   :  { %1131 = vadd.xlane.f32.xlu1 %v1048_v50 }
  0x96   :  { %2444 = vmatmul.mubr.bf16.gmra.mxu0 %v3101_v37  ;;  %v997_v37 = vunpack.c.l.bf16 %v3164_v39 }
  0x97   :  { %2445 = vmatprep.mubr.bf16.mxu0 %v3105_v43 }
  0x98   :  { %v1045_v42 = vmul.f32 %v997_v37, %v997_v37 }
  0x99   :  { %2550 = vmatmul.mubr.bf16.gmra.mxu1 %v3126_v15 }
  0x9a   :  { %1125 = vadd.xlane.f32.xlu0 %v1045_v42  ;;  %2553 = vmatprep.mubr.bf16.mxu1 %v3132_v20 }
  0x9e   :  { %2446 = vmatmul.mubr.bf16.gmra.mxu0 %v3105_v43  ;;  %v999_v43 = vunpack.c.l.bf16 %v3172_v44 }
  0x9f   :  { %2447 = vmatprep.mubr.bf16.mxu0 %v3108_v49 }
  0xa0   :  { %v1047_v47 = vmul.f32 %v999_v43, %v999_v43 }
  0xa1   :  { %2554 = vmatmul.mubr.bf16.gmra.mxu1 %v3140_v26 }
  0xa2   :  { %1129 = vadd.xlane.f32.xlu0 %v1047_v47  ;;  %2557 = vmatprep.mubr.bf16.mxu1 %v3148_v8 }
  0xa6   :  { %2448 = vmatmul.mubr.bf16.gmra.mxu0 %v3108_v49  ;;  %v3184_v49 = vld [vmem:[#allocation5 + $0x90] sm:$0xff]  }
  0xa7   :  { %2449 = vmatprep.mubr.bf16.mxu0 %v3112_v58  ;;  %v1001_v51 = vunpack.c.l.bf16 %v3184_v49  ;;  %v1002_v53 = vunpack.c.h.bf16 %v3184_v49 }
  0xa9   :  { %v1049_v52 = vmul.f32 %v1001_v51, %v1001_v51  ;;  %2558 = vmatmul.mubr.bf16.gmra.mxu1 %v3156_v24  ;;  %v1050_v54 = vmul.f32 %v1002_v53, %v1002_v53 }
  0xaa   :  { %2561 = vmatprep.mubr.bf16.mxu1 %v3164_v39 }
  0xab   :  { %1133 = vadd.xlane.f32.xlu0 %v1049_v52  ;;  %1135 = vadd.xlane.f32.xlu1 %v1050_v54 }
  0xae   :  { %2450 = vmatmul.mubr.bf16.gmra.mxu0 %v3112_v58  ;;  %v1004_v58 = vunpack.c.h.bf16 %v3192_v55 }
  0xaf   :  { %2451 = vmatprep.mubr.bf16.mxu0 %v3116_v1  ;;  %1137 = vadd.xlane.f32.xlu0 %v1051_v57 }
  0xb0   :  { %v1052_v59 = vmul.f32 %v1004_v58, %v1004_v58 }
  0xb1   :  { %2562 = vmatmul.mubr.bf16.gmra.mxu1 %v3172_v44 }
  0xb2   :  { %2565 = vmatprep.mubr.bf16.mxu1 %v3184_v49  ;;  %1139 = vadd.xlane.f32.xlu1 %v1052_v59 }
  0xb3   :  { %1141 = vadd.xlane.f32.xlu0 %v1053_v62 }
  0xb6   :  { %2452 = vmatmul.mubr.bf16.gmra.mxu0 %v3116_v1  ;;  %v3208_v1 = vld [vmem:[#allocation5 + $0xa8] sm:$0xff]   ;;  %1143 = vadd.xlane.f32.xlu1 %v1054_v0 }
  0xb7   :  { %2453 = vmatprep.mubr.bf16.mxu0 %v3120_v9  ;;  %v1007_v2 = vunpack.c.l.bf16 %v3208_v1  ;;  %v1008_v5 = vunpack.c.h.bf16 %v3208_v1 }
  0xb9   :  { %2566 = vmatmul.mubr.bf16.gmra.mxu1 %v3192_v55  ;;  %v1055_v4 = vmul.f32 %v1007_v2, %v1007_v2  ;;  %v1056_v6 = vmul.f32 %v1008_v5, %v1008_v5 }
  0xba   :  { %2569 = vmatprep.mubr.bf16.mxu1 %v3200_v60 }
  0xbb   :  { %1145 = vadd.xlane.f32.xlu0 %v1055_v4  ;;  %1147 = vadd.xlane.f32.xlu1 %v1056_v6 }
  0xbe   :  { %2454 = vmatmul.mubr.bf16.gmra.mxu0 %v3120_v9  ;;  %v3219_v9 = vld [vmem:[#allocation5 + $0xb8] sm:$0xff]   ;;  %v1062_v7 = vpop.xlane.xlu0 %1061  ;;  %v1066_v19 = vpop.xlane.xlu1 %1065 }
  0xbf   :  { %2455 = vmatprep.mubr.bf16.mxu0 %v3126_v15  ;;  %1149 = vadd.xlane.f32.xlu0 %v1057_v11  ;;  %v1012_v14 = vunpack.c.h.bf16 %v3219_v9 }
  0xc0   :  { %1151 = vadd.xlane.f32.xlu1 %v1058_v13 }
  0xc1   :  { %2570 = vmatmul.mubr.bf16.gmra.mxu1 %v3208_v1  ;;  %v1060_v17 = vmul.f32 %v1012_v14, %v1012_v14 }
  0xc2   :  { %2573 = vmatprep.mubr.bf16.mxu1 %v3212_v3  ;;  %v1068_v21 = vpop.xlane.xlu1 %1067 }
  0xc4   :  { %1155 = vadd.xlane.f32.xlu1 %v1060_v17 }
  0xc6   :  { %2456 = vmatmul.mubr.bf16.gmra.mxu0 %v3126_v15  ;;  %v1011_v15 = vunpack.c.l.bf16 %v3219_v9  ;;  %v1072_v23 = vpop.xlane.xlu1 %1071 }
  0xc7   :  { %2457 = vmatprep.mubr.bf16.mxu0 %v3132_v20 }
  0xc8   :  { %v1059_v18 = vmul.f32 %v1011_v15, %v1011_v15 }
  0xc9   :  { %2574 = vmatmul.mubr.bf16.gmra.mxu1 %v3219_v9 }
  0xca   :  { %1153 = vadd.xlane.f32.xlu0 %v1059_v18 }
  0xce   :  { %2458 = vmatmul.mubr.bf16.gmra.mxu0 %v3132_v20  ;;  %v1064_v20 = vpop.xlane.xlu0 %1063 }
  0xcf   :  { %2459 = vmatprep.mubr.bf16.mxu0 %v3140_v26 }
  0xd2   :  { %v1070_v22 = vpop.xlane.xlu0 %1069 }
  0xd6   :  { %2460 = vmatmul.mubr.bf16.gmra.mxu0 %v3140_v26  ;;  %v3238_v25 = vpop.xlane.xlu0 %1073  ;;  %v3240_v26 = vpop.xlane.xlu1 %1075 }
  0xd7   :  { %2461 = vmatprep.mubr.bf16.mxu0 %v3148_v8 }
  0xda   :  { %v3242_v27 = vpop.xlane.xlu0 %1077  ;;  %v3246_v28 = vpop.xlane.xlu1 %1079 }
  0xde   :  { %2462 = vmatmul.mubr.bf16.gmra.mxu0 %v3148_v8  ;;  %v3253_v29 = vpop.xlane.xlu0 %1081  ;;  %v3255_v31 = vpop.xlane.xlu1 %1083 }
  0xdf   :  { %2463 = vmatprep.mubr.bf16.mxu0 %v3156_v24 }
  0xe2   :  { %v3258_v8 = vpop.xlane.xlu0 %1085  ;;  %v3262_v32 = vpop.xlane.xlu1 %1087 }
  0xe6   :  { %2464 = vmatmul.mubr.bf16.gmra.mxu0 %v3156_v24  ;;  %v3265_v33 = vpop.xlane.xlu0 %1089  ;;  %v3267_v24 = vpop.xlane.xlu1 %1091 }
  0xe7   :  { %2465 = vmatprep.mubr.bf16.mxu0 %v3164_v39 }
  0xea   :  { %v3272_v35 = vpop.xlane.xlu0 %1093  ;;  %v3276_v40 = vpop.xlane.xlu1 %1095 }
  0xee   :  { %2466 = vmatmul.mubr.bf16.gmra.mxu0 %v3164_v39  ;;  %v1157_v39 = vld [vmem:[%s75_s28] sm:$0x7]  ;;  %v3278_v37 = vpop.xlane.xlu0 %1097  ;;  %v3286_v45 = vpop.xlane.xlu1 %1099 }
  0xef   :  { %2467 = vmatprep.mubr.bf16.mxu0 %v3172_v44  ;;  %v3280_v41 = vrot.slane %v1157_v39, %v1161_v30  ;;  %v3282_v42 = vrot.slane %v1157_v39, %v1165_v36 }
  0xf1   :  { %4028 = vst [vmem:[#allocation14_spill] sm:$0xff] %v3282_v42  ;;  %v3292_v46 = vadd.f32 %v3280_v41, %v1062_v7  ;;  %v3295_v47 = vadd.f32 %v3282_v42, %v1062_v7  ;;  %v3301_v50 = vadd.f32 %v3280_v41, %v1066_v19  ;;  %v3308_v51 = vadd.f32 %v3282_v42, %v1064_v20 }
  0xf2   :  { %v3288_v43 = vpop.xlane.xlu0 %1101  ;;  %v3311_v52 = vadd.f32 %v3282_v42, %v1066_v19  ;;  %v3322_v56 = vadd.f32 %v3280_v41, %v1068_v21  ;;  %v3325_v57 = vadd.f32 %v3282_v42, %v1068_v21  ;;  %v3331_v59 = vadd.f32 %v3280_v41, %v1070_v22 }
  0xf3   :  { %v3337_v61 = vadd.f32 %v3280_v41, %v1072_v23  ;;  %v3340_v62 = vadd.f32 %v3282_v42, %v1072_v23  ;;  %v3353_v2 = vadd.f32 %v3282_v42, %v3238_v25  ;;  %v3364_v5 = vadd.f32 %v3282_v42, %v3240_v26 }
  0xf4   :  { %v3368_v6 = vadd.f32 %v3280_v41, %v3242_v27  ;;  %v3372_v10 = vadd.f32 %v3282_v42, %v3242_v27  ;;  %v3382_v13 = vadd.f32 %v3280_v41, %v3246_v28  ;;  %v3386_v14 = vadd.f32 %v3282_v42, %v3246_v28 }
  0xf5   :  { %v3390_v15 = vadd.f32 %v3280_v41, %v3253_v29  ;;  %v3398_v18 = vadd.f32 %v3282_v42, %v3253_v29  ;;  %v3441_v16 = vadd.f32 %v3282_v42, %v3265_v33  ;;  %v3455_v36 = vadd.f32 %v3282_v42, %v3267_v24 }
  0xf6   :  { %2468 = vmatmul.mubr.bf16.gmra.mxu0 %v3172_v44  ;;  %v3284_v44 = vrot.slane %v1157_v39, %v1169_v38  ;;  %v3342_v63 = vpop.xlane.xlu0 %1105  ;;  %v3459_v38 = vadd.f32 %v3280_v41, %v3272_v35 }
  0xf7   :  { %2469 = vmatprep.mubr.bf16.mxu0 %v3184_v49 }
  0xf8   :  { %v3298_v48 = vadd.f32 %v3284_v44, %v1062_v7  ;;  %v3314_v53 = vadd.f32 %v3284_v44, %v1066_v19  ;;  %v3328_v58 = vadd.f32 %v3284_v44, %v1068_v21  ;;  %v3345_v0 = vadd.f32 %v3284_v44, %v1070_v22  ;;  %4032 = vst [vmem:[#allocation18_spill] sm:$0xff] %v3459_v38 }
  0xf9   :  { %v3316_v54 = vpop.xlane.xlu1 %1103  ;;  %v3360_v4 = vadd.f32 %v3284_v44, %v1072_v23  ;;  %v3378_v12 = vadd.f32 %v3284_v44, %v3238_v25  ;;  %v3394_v17 = vadd.f32 %v3284_v44, %v3240_v26  ;;  %v3402_v7 = vadd.f32 %v3280_v41, %v3255_v31 }
  0xfa   :  { %v3406_v19 = vadd.f32 %v3282_v42, %v3255_v31  ;;  %v3413_v21 = vadd.f32 %v3284_v44, %v3242_v27  ;;  %v3421_v23 = vadd.f32 %v3282_v42, %v3258_v8  ;;  %v3437_v27 = vadd.f32 %v3280_v41, %v3265_v33 }
  0xfb   :  { %v3447_v30 = vadd.f32 %v3284_v44, %v3253_v29  ;;  %v3463_v39 = vadd.f32 %v3284_v44, %v3255_v31  ;;  %v3467_v29 = vadd.f32 %v3284_v44, %v3258_v8  ;;  %v3479_v38 = vadd.f32 %v3284_v44, %v3262_v32 }
  0xfc   :  { %4029 = vst [vmem:[#allocation15_spill] sm:$0xff] %v3413_v21  ;;  %v3475_v21 = vadd.f32 %v3280_v41, %v3276_v40  ;;  %v3483_v31 = vadd.f32 %v3282_v42, %v3276_v40 }
  0xfd   :  { %v3374_v11 = vpop.xlane.xlu1 %1107  ;;  %4031 = vst [vmem:[#allocation17_spill] sm:$0xff] %v3447_v30  ;;  %4033 = vst [vmem:[#allocation19_spill] sm:$0xff] %v3463_v39  ;;  %v3495_v39 = vadd.f32 %v3284_v44, %v3265_v33  ;;  %v3515_v33 = vadd.f32 %v3284_v44, %v3272_v35 }
  0xfe   :  { %2470 = vmatmul.mubr.bf16.gmra.mxu0 %v3184_v49  ;;  %v3305_v49 = vadd.f32 %v3280_v41, %v1064_v20  ;;  %4034 = vst [vmem:[#allocation20_spill] sm:$0xff] %v3467_v29  ;;  %4035 = vst [vmem:[#allocation21_spill] sm:$0xff] %v3475_v21  ;;  %v3491_v29 = vadd.f32 %v3282_v42, %v3278_v37 }
  0xff   :  { %2471 = vmatprep.mubr.bf16.mxu0 %v3192_v55  ;;  %4036 = vst [vmem:[#allocation22_spill] sm:$0xff] %v3479_v38  ;;  %4037 = vst [vmem:[#allocation23_spill] sm:$0xff] %v3483_v31  ;;  %v3503_v38 = vadd.f32 %v3282_v42, %v3286_v45  ;;  %v3507_v31 = vadd.f32 %v3280_v41, %v3288_v43 }
 0x100   :  { %4039 = vst [vmem:[#allocation25_spill] sm:$0xff] %v3491_v29  ;;  %4040 = vst [vmem:[#allocation26_spill] sm:$0xff] %v3495_v39  ;;  %v3511_v29 = vadd.f32 %v3284_v44, %v3267_v24  ;;  %v3519_v39 = vadd.f32 %v3282_v42, %v3288_v43 }
 0x101   :  { %v3443_v34 = vpop.xlane.xlu1 %1111  ;;  %4042 = vst [vmem:[#allocation28_spill] sm:$0xff] %v3503_v38  ;;  %4043 = vst [vmem:[#allocation29_spill] sm:$0xff] %v3507_v31  ;;  %v3523_v38 = vadd.f32 %v3280_v41, %v3316_v54  ;;  %v3527_v31 = vadd.f32 %v3284_v44, %v3276_v40  ;;  %v3549_v40 = vadd.f32 %v3280_v41, %v3374_v11 }
 0x102   :  { %4044 = vst [vmem:[#allocation30_spill] sm:$0xff] %v3511_v29  ;;  %4045 = vst [vmem:[#allocation31_spill] sm:$0xff] %v3515_v33  ;;  %v3539_v33 = vadd.f32 %v3282_v42, %v3342_v63 }
 0x103   :  { %4046 = vst [vmem:[#allocation32_spill] sm:$0xff] %v3519_v39  ;;  %4047 = vst [vmem:[#allocation33_spill] sm:$0xff] %v3523_v38  ;;  %v3545_v38 = vadd.f32 %v3284_v44, %v3278_v37 }
 0x104   :  { %4048 = vst [vmem:[#allocation34_spill] sm:$0xff] %v3527_v31  ;;  %4051 = vst [vmem:[#allocation37_spill] sm:$0xff] %v3539_v33  ;;  %v3553_v31 = vadd.f32 %v3282_v42, %v3374_v11 }
 0x105   :  { %4052 = vst [vmem:[#allocation38_spill] sm:$0xff] %v3545_v38  ;;  %4053 = vst [vmem:[#allocation39_spill] sm:$0xff] %v3549_v40  ;;  %v3569_v38 = vadd.f32 %v3280_v41, %v3443_v34 }
 0x106   :  { %2472 = vmatmul.mubr.bf16.gmra.mxu0 %v3192_v55  ;;  %v3319_v55 = vadd.f32 %v3284_v44, %v1064_v20  ;;  %v3408_v20 = vpop.xlane.xlu0 %1109  ;;  %4054 = vst [vmem:[#allocation40_spill] sm:$0xff] %v3553_v31 }
 0x107   :  { %2473 = vmatprep.mubr.bf16.mxu0 %v3200_v60  ;;  %4058 = vst [vmem:[#allocation44_spill] sm:$0xff] %v3569_v38 }
 0x10a   :  { %v1114_v30 = vpop.xlane.xlu0 %1113 }
 0x10e   :  { %2474 = vmatmul.mubr.bf16.gmra.mxu0 %v3200_v60  ;;  %v3334_v60 = vadd.f32 %v3282_v42, %v1070_v22  ;;  %v3417_v22 = vadd.f32 %v3280_v41, %v3258_v8  ;;  %v3487_v8 = vadd.f32 %v3280_v41, %v3278_v37  ;;  %v3541_v29 = vpop.xlane.xlu0 %1117  ;;  %v3565_v37 = vadd.f32 %v3282_v42, %v3408_v20 }
 0x10f   :  { %2475 = vmatprep.mubr.bf16.mxu0 %v3208_v1 }
 0x110   :  { %4038 = vst [vmem:[#allocation24_spill] sm:$0xff] %v3487_v8  ;;  %v1116_v8 = vpop.xlane.xlu1 %1115  ;;  %4057 = vst [vmem:[#allocation43_spill] sm:$0xff] %v3565_v37 }
 0x114   :  { %v3571_v40 = vpop.xlane.xlu1 %1119 }
 0x116   :  { %2476 = vmatmul.mubr.bf16.gmra.mxu0 %v3208_v1  ;;  %v3349_v1 = vadd.f32 %v3280_v41, %v3238_v25  ;;  %v3425_v25 = vadd.f32 %v3280_v41, %v3262_v32 }
 0x117   :  { %2477 = vmatprep.mubr.bf16.mxu0 %v3212_v3 }
 0x11e   :  { %2478 = vmatmul.mubr.bf16.gmra.mxu0 %v3212_v3  ;;  %v3357_v3 = vadd.f32 %v3280_v41, %v3240_v26  ;;  %v3429_v26 = vadd.f32 %v3284_v44, %v3246_v28  ;;  %v3451_v28 = vadd.f32 %v3280_v41, %v3267_v24  ;;  %v3531_v24 = vadd.f32 %v3282_v42, %v3316_v54 }
 0x11f   :  { %2479 = vmatprep.mubr.bf16.mxu0 %v3219_v9 }
 0x120   :  { %4030 = vst [vmem:[#allocation16_spill] sm:$0xff] %v3429_v26  ;;  %v3471_v26 = vadd.f32 %v3282_v42, %v3272_v35  ;;  %4049 = vst [vmem:[#allocation35_spill] sm:$0xff] %v3531_v24  ;;  %v3535_v35 = vadd.f32 %v3280_v41, %v3342_v63  ;;  %v3561_v24 = vadd.f32 %v3284_v44, %v3286_v45 }
 0x122   :  { %4050 = vst [vmem:[#allocation36_spill] sm:$0xff] %v3535_v35  ;;  %v3557_v35 = vadd.f32 %v3280_v41, %v3408_v20  ;;  %4056 = vst [vmem:[#allocation42_spill] sm:$0xff] %v3561_v24  ;;  %v3586_v24 = vadd.f32 %v3280_v41, %v1114_v30 }
 0x124   :  { %4055 = vst [vmem:[#allocation41_spill] sm:$0xff] %v3557_v35  ;;  %4062 = vst [vmem:[#allocation48_spill] sm:$0xff] %v3586_v24  ;;  %v3590_v35 = vadd.f32 %v3282_v42, %v1114_v30  ;;  %v3615_v24 = vadd.f32 %v3282_v42, %v3541_v29 }
 0x126   :  { %2480 = vmatmul.mubr.bf16.gmra.mxu0 %v3219_v9  ;;  %v3433_v9 = vadd.f32 %v3282_v42, %v3262_v32  ;;  %v3499_v32 = vadd.f32 %v3280_v41, %v3286_v45  ;;  %v3583_v45 = vadd.f32 %v3282_v42, %v3443_v34  ;;  %4063 = vst [vmem:[#allocation49_spill] sm:$0xff] %v3590_v35  ;;  %4069 = vst [vmem:[#allocation55_spill] sm:$0xff] %v3615_v24 }
 0x128   :  { %4041 = vst [vmem:[#allocation27_spill] sm:$0xff] %v3499_v32  ;;  %v3575_v32 = vadd.f32 %v3284_v44, %v3288_v43  ;;  %4061 = vst [vmem:[#allocation47_spill] sm:$0xff] %v3583_v45  ;;  %v3593_v43 = vadd.f32 %v3280_v41, %v1116_v8  ;;  %v3603_v45 = vadd.f32 %v3284_v44, %v3374_v11 }
 0x129   :  { %v3621_v11 = vadd.f32 %v3284_v44, %v3408_v20 }
 0x12a   :  { %4059 = vst [vmem:[#allocation45_spill] sm:$0xff] %v3575_v32  ;;  %4064 = vst [vmem:[#allocation50_spill] sm:$0xff] %v3593_v43  ;;  %v3595_v32 = vpop.xlane.xlu0 %1121 }
 0x12b   :  { %4066 = vst [vmem:[#allocation52_spill] sm:$0xff] %v3603_v45  ;;  %4070 = vst [vmem:[#allocation56_spill] sm:$0xff] %v3621_v11  ;;  %v3625_v45 = vadd.f32 %v3280_v41, %v3571_v40  ;;  %v3640_v11 = vadd.f32 %v3284_v44, %v3443_v34  ;;  %v3655_v34 = vadd.f32 %v3284_v44, %v1116_v8 }
 0x12d   :  { %4071 = vst [vmem:[#allocation57_spill] sm:$0xff] %v3625_v45  ;;  %4074 = vst [vmem:[#allocation60_spill] sm:$0xff] %v3640_v11  ;;  %v3643_v45 = vadd.f32 %v3284_v44, %v1114_v30 }
 0x12e   :  { %v501_v39 = vpop.f32.mrf.mxu0  ;;  %4076 = vst [vmem:[#allocation62_spill] sm:$0xff] %v3655_v34 }
 0x12f   :  { %v1318_v33 = vmul.f32 2.0, %v501_v39  ;;  %v3579_v39 = vadd.f32 %v3284_v44, %v3316_v54  ;;  %4075 = vst [vmem:[#allocation61_spill] sm:$0xff] %v3643_v45 }
 0x130   :  { %v503_v31 = vpop.f32.mrf.mxu0 }
 0x131   :  { %4060 = vst [vmem:[#allocation46_spill] sm:$0xff] %v3579_v39  ;;  %v1462_v38 = vsub.f32 %v3292_v46, %v1318_v33  ;;  %v1319_v37 = vmul.f32 2.0, %v503_v31  ;;  %v3599_v39 = vadd.f32 %v3284_v44, %v3342_v63  ;;  %v3606_v46 = vadd.f32 %v3282_v42, %v1116_v8  ;;  %v3617_v63 = vpop.xlane.xlu1 %1123 }
 0x132   :  { %v505_v54 = vpop.f32.mrf.mxu0  ;;  %v3610_v31 = vadd.f32 %v3280_v41, %v3541_v29  ;;  %v3659_v30 = vadd.f32 %v3282_v42, %v3617_v63  ;;  %v3670_v8 = vadd.f32 %v3284_v44, %v3541_v29 }
 0x133   :  { %4065 = vst [vmem:[#allocation51_spill] sm:$0xff] %v3599_v39  ;;  %4067 = vst [vmem:[#allocation53_spill] sm:$0xff] %v3606_v46  ;;  %v1606_v33 = vmax.f32 %v1462_v38, 0.0  ;;  %v1463_v43 = vsub.f32 %v3295_v47, %v1319_v37  ;;  %v1321_v35 = vmul.f32 2.0, %v505_v54  ;;  %v3629_v38 = vadd.f32 %v3282_v42, %v3571_v40  ;;  %v3636_v46 = vpop.xlane.xlu0 %1125 }
 0x134   :  { %4068 = vst [vmem:[#allocation54_spill] sm:$0xff] %v3610_v31  ;;  %v507_v39 = vpop.f32.mrf.mxu0  ;;  %v3633_v47 = vadd.f32 %v3280_v41, %v3595_v32  ;;  %4077 = vst [vmem:[#allocation63_spill] sm:$0xff] %v3659_v30  ;;  %v3663_v11 = vadd.f32 %v3280_v41, %v3636_v46  ;;  %v3674_v34 = vadd.f32 %v3282_v42, %v3636_v46 }
 0x135   :  { %4072 = vst [vmem:[#allocation58_spill] sm:$0xff] %v3629_v38  ;;  %v1750_v37 = vmul.f32 -0.013888889, %v1606_v33  ;;  %v1607_v54 = vmax.f32 %v1463_v43, 0.0  ;;  %v1465_v24 = vsub.f32 %v3305_v49, %v1321_v35  ;;  %v1322_v31 = vmul.f32 2.0, %v507_v39  ;;  %4079 = vst [vmem:[#allocation65_spill] sm:$0xff] %v3670_v8 }
 0x136   :  { %4073 = vst [vmem:[#allocation59_spill] sm:$0xff] %v3633_v47  ;;  %v511_v20 = vpop.f32.mrf.mxu0  ;;  %v3647_v38 = vadd.f32 %v3282_v42, %v3595_v32  ;;  %v3651_v43 = vadd.f32 %v3280_v41, %v3617_v63  ;;  %4078 = vst [vmem:[#allocation64_spill] sm:$0xff] %v3663_v11 }
 0x137   :  { %v1894_v49 = vmul.f32 1.442695, %v1750_v37  ;;  %v1751_v35 = vmul.f32 -0.013888889, %v1607_v54  ;;  %v1609_v39 = vmax.f32 %v1465_v24, 0.0  ;;  %v1466_v33 = vsub.f32 %v3308_v51, %v1322_v31  ;;  %v3665_v24 = vpop.xlane.xlu1 %1127 }
 0x138   :  { %v1324_v47 = vmul.f32 2.0, %v511_v20  ;;  %v513_v21 = vpop.f32.mrf.mxu0  ;;  %v3685_v29 = vadd.f32 %v3282_v42, %v3665_v24 }
 0x139   :  { %2658 = vpow2.f32 %v1894_v49  ;;  %v1896_v45 = vmul.f32 1.442695, %v1751_v35  ;;  %v1753_v37 = vmul.f32 -0.013888889, %v1609_v39  ;;  %v1610_v54 = vmax.f32 %v1466_v33, 0.0  ;;  %v3676_v39 = vpop.xlane.xlu0 %1129 }
 0x13a   :  { %v1468_v51 = vsub.f32 %v3301_v50, %v1324_v47  ;;  %v1325_v31 = vmul.f32 2.0, %v513_v21  ;;  %v515_v20 = vpop.f32.mrf.mxu0  ;;  %v3681_v21 = vadd.f32 %v3280_v41, %v3665_v24  ;;  %4081 = vst [vmem:[#allocation67_spill] sm:$0xff] %v3685_v29 }
 0x13b   :  { %2660 = vpow2.f32 %v1896_v45  ;;  %v1900_v11 = vmul.f32 1.442695, %v1753_v37  ;;  %v1754_v49 = vmul.f32 -0.013888889, %v1610_v54  ;;  %v1327_v35 = vmul.f32 2.0, %v515_v20 }
 0x13c   :  { %v1612_v33 = vmax.f32 %v1468_v51, 0.0  ;;  %v1469_v30 = vsub.f32 %v3311_v52, %v1325_v31  ;;  %v517_v50 = vpop.f32.mrf.mxu0  ;;  %4080 = vst [vmem:[#allocation66_spill] sm:$0xff] %v3681_v21  ;;  %v3690_v52 = vadd.f32 %v3284_v44, %v3571_v40  ;;  %v3694_v51 = vadd.f32 %v3280_v41, %v3676_v39 }
 0x13d   :  { %2662 = vpow2.f32 %v1900_v11  ;;  %v1902_v47 = vmul.f32 1.442695, %v1754_v49  ;;  %v1471_v45 = vsub.f32 %v3322_v56, %v1327_v35  ;;  %v1328_v37 = vmul.f32 2.0, %v517_v50  ;;  %v2531_v35 = vpop.f32.mrf.mxu1 }
 0x13e   :  { %v1756_v54 = vmul.f32 -0.013888889, %v1612_v33  ;;  %v1613_v20 = vmax.f32 %v1469_v30, 0.0  ;;  %v521_v8 = vpop.f32.mrf.mxu0  ;;  %4082 = vst [vmem:[#allocation68_spill] sm:$0xff] %v3690_v52  ;;  %v3699_v30 = vadd.f32 %v3284_v44, %v3595_v32  ;;  %v3703_v40 = vadd.f32 %v3282_v42, %v3676_v39 }
 0x13f   :  { %2664 = vpow2.f32 %v1902_v47  ;;  %v1615_v31 = vmax.f32 %v1471_v45, 0.0  ;;  %v1472_v29 = vsub.f32 %v3325_v57, %v1328_v37  ;;  %v1330_v11 = vmul.f32 2.0, %v521_v8  ;;  %v774_v42 = vpop.f32.mrf.mxu1 }
 0x140   :  { %v1906_v49 = vmul.f32 1.442695, %v1756_v54  ;;  %v1757_v21 = vmul.f32 -0.013888889, %v1613_v20  ;;  %v523_v56 = vpop.f32.mrf.mxu0  ;;  %4083 = vst [vmem:[#allocation69_spill] sm:$0xff] %v3699_v30  ;;  %v1326_v37 = vmul.f32 2.0, %v2531_v35  ;;  %v3708_v54 = vadd.f32 %v3284_v44, %v3617_v63 }
 0x141   :  { %v1759_v33 = vmul.f32 -0.013888889, %v1615_v31  ;;  %v1616_v50 = vmax.f32 %v1472_v29, 0.0  ;;  %v1474_v47 = vsub.f32 %v3331_v59, %v1330_v11  ;;  %v1331_v45 = vmul.f32 2.0, %v523_v56 }
 0x142   :  { %2666 = vpow2.f32 %v1906_v49  ;;  %v1908_v57 = vmul.f32 1.442695, %v1757_v21  ;;  %v525_v8 = vpop.f32.mrf.mxu0  ;;  %4084 = vst [vmem:[#allocation70_spill] sm:$0xff] %v3708_v54  ;;  %v1470_v59 = vsub.f32 %v3314_v53, %v1326_v37  ;;  %v1320_v11 = vmul.f32 2.0, %v774_v42 }
 0x143   :  { %v1912_v20 = vmul.f32 1.442695, %v1759_v33  ;;  %v1760_v32 = vmul.f32 -0.013888889, %v1616_v50  ;;  %v1618_v52 = vmax.f32 %v1474_v47, 0.0  ;;  %v1475_v30 = vsub.f32 %v3334_v60, %v1331_v45 }
 0x144   :  { %2668 = vpow2.f32 %v1908_v57  ;;  %v1333_v31 = vmul.f32 2.0, %v525_v8  ;;  %v527_v29 = vpop.f32.mrf.mxu0  ;;  %v1614_v50 = vmax.f32 %v1470_v59, 0.0  ;;  %v1464_v47 = vsub.f32 %v3298_v48, %v1320_v11 }
 0x145   :  { %2670 = vpow2.f32 %v1912_v20  ;;  %v1914_v21 = vmul.f32 1.442695, %v1760_v32  ;;  %v1762_v49 = vmul.f32 -0.013888889, %v1618_v52  ;;  %v1619_v56 = vmax.f32 %v1475_v30, 0.0 }
 0x146   :  { %v2659_v35 = vpop.eup %2658  ;;  %v1477_v63 = vsub.f32 %v3337_v61, %v1333_v31  ;;  %v1334_v54 = vmul.f32 2.0, %v527_v29  ;;  %v531_v33 = vpop.f32.mrf.mxu0  ;;  %v1758_v52 = vmul.f32 -0.013888889, %v1614_v50  ;;  %v1608_v30 = vmax.f32 %v1464_v47, 0.0 }
 0x147   :  { %2182 = vst [vmem:[#allocation10] sm:$0xff] %v2659_v35  ;;  %2672 = vpow2.f32 %v1914_v21  ;;  %v1918_v60 = vmul.f32 1.442695, %v1762_v49  ;;  %v1763_v45 = vmul.f32 -0.013888889, %v1619_v56  ;;  %v1336_v57 = vmul.f32 2.0, %v531_v33  ;;  %v2532_v31 = vpop.f32.mrf.mxu1 }
 0x148   :  { %v2661_v8 = vpop.eup %2660  ;;  %v1621_v53 = vmax.f32 %v1477_v63, 0.0  ;;  %v1478_v42 = vsub.f32 %v3340_v62, %v1334_v54  ;;  %v533_v37 = vpop.f32.mrf.mxu0  ;;  %v1910_v21 = vmul.f32 1.442695, %v1758_v52  ;;  %v1329_v49 = vmul.f32 2.0, %v2532_v31 }
 0x149   :  { %2183 = vst [vmem:[#allocation10 + $0x8] sm:$0xff] %v2661_v8  ;;  %2674 = vpow2.f32 %v1918_v60  ;;  %v1920_v61 = vmul.f32 1.442695, %v1763_v45  ;;  %v1480_v20 = vsub.f32 %v3349_v1, %v1336_v57  ;;  %v1337_v32 = vmul.f32 2.0, %v533_v37  ;;  %v777_v8 = vpop.f32.mrf.mxu1 }
 0x14a   :  { %v2663_v48 = vpop.eup %2662  ;;  %v1765_v29 = vmul.f32 -0.013888889, %v1621_v53  ;;  %v1622_v59 = vmax.f32 %v1478_v42, 0.0  ;;  %v535_v11 = vpop.f32.mrf.mxu0  ;;  %v1752_v1 = vmul.f32 -0.013888889, %v1608_v30 }
 0x14b   :  { %2185 = vst [vmem:[#allocation10 + $0x18] sm:$0xff] %v2663_v48  ;;  %2676 = vpow2.f32 %v1920_v61  ;;  %v1624_v56 = vmax.f32 %v1480_v20, 0.0  ;;  %v1481_v62 = vsub.f32 %v3353_v2, %v1337_v32  ;;  %v1339_v54 = vmul.f32 2.0, %v535_v11 }
 0x14c   :  { %v2665_v35 = vpop.eup %2664  ;;  %v1924_v63 = vmul.f32 1.442695, %v1765_v29  ;;  %v1766_v33 = vmul.f32 -0.013888889, %v1622_v59  ;;  %v537_v50 = vpop.f32.mrf.mxu0  ;;  %2678 = vpow2.f32 %v1910_v21  ;;  %v1898_v37 = vmul.f32 1.442695, %v1752_v1 }
 0x14d   :  { %2186 = vst [vmem:[#allocation10 + $0x20] sm:$0xff] %v2665_v35  ;;  %v1768_v47 = vmul.f32 -0.013888889, %v1624_v56  ;;  %v1625_v60 = vmax.f32 %v1481_v62, 0.0  ;;  %v1483_v45 = vsub.f32 %v3357_v3, %v1339_v54  ;;  %v1340_v57 = vmul.f32 2.0, %v537_v50 }
 0x14e   :  { %2680 = vpow2.f32 %v1924_v63  ;;  %v1926_v53 = vmul.f32 1.442695, %v1766_v33  ;;  %v541_v42 = vpop.f32.mrf.mxu0  ;;  %v1473_v2 = vsub.f32 %v3328_v58, %v1329_v49  ;;  %v1323_v3 = vmul.f32 2.0, %v777_v8 }
 0x14f   :  { %v2667_v52 = vpop.eup %2666  ;;  %v1930_v61 = vmul.f32 1.442695, %v1768_v47  ;;  %v1769_v20 = vmul.f32 -0.013888889, %v1625_v60  ;;  %v1627_v32 = vmax.f32 %v1483_v45, 0.0  ;;  %v1484_v31 = vsub.f32 %v3364_v5, %v1340_v57 }
 0x150   :  { %2188 = vst [vmem:[#allocation10 + $0x30] sm:$0xff] %v2667_v52  ;;  %2682 = vpow2.f32 %v1926_v53  ;;  %v1342_v30 = vmul.f32 2.0, %v541_v42  ;;  %v543_v48 = vpop.f32.mrf.mxu0  ;;  %v1617_v29 = vmax.f32 %v1473_v2, 0.0  ;;  %v1467_v57 = vsub.f32 %v3319_v55, %v1323_v3 }
 0x151   :  { %v2669_v59 = vpop.eup %2668  ;;  %2684 = vpow2.f32 %v1930_v61  ;;  %v1932_v11 = vmul.f32 1.442695, %v1769_v20  ;;  %v1771_v21 = vmul.f32 -0.013888889, %v1627_v32  ;;  %v1628_v56 = vmax.f32 %v1484_v31, 0.0  ;;  %v2535_v31 = vpop.f32.mrf.mxu1 }
 0x152   :  { %v2671_v62 = vpop.eup %2670  ;;  %2189 = vst [vmem:[#allocation10 + $0x38] sm:$0xff] %v2669_v59  ;;  %v1486_v58 = vsub.f32 %v3368_v6, %v1342_v30  ;;  %v1343_v49 = vmul.f32 2.0, %v543_v48  ;;  %v545_v54 = vpop.f32.mrf.mxu0  ;;  %2686 = vpow2.f32 %v1898_v37  ;;  %v1761_v35 = vmul.f32 -0.013888889, %v1617_v29 }
 0x153   :  { %2191 = vst [vmem:[#allocation10 + $0x48] sm:$0xff] %v2671_v62  ;;  %2688 = vpow2.f32 %v1932_v11  ;;  %v1936_v5 = vmul.f32 1.442695, %v1771_v21  ;;  %v1772_v63 = vmul.f32 -0.013888889, %v1628_v56  ;;  %v1345_v33 = vmul.f32 2.0, %v545_v54 }
 0x154   :  { %v2673_v50 = vpop.eup %2672  ;;  %v1630_v1 = vmax.f32 %v1486_v58, 0.0  ;;  %v1487_v47 = vsub.f32 %v3372_v10, %v1343_v49  ;;  %v547_v60 = vpop.f32.mrf.mxu0  ;;  %v1916_v45 = vmul.f32 1.442695, %v1761_v35  ;;  %v1611_v61 = vmax.f32 %v1467_v57, 0.0 }
 0x155   :  { %2192 = vst [vmem:[#allocation10 + $0x50] sm:$0xff] %v2673_v50  ;;  %2690 = vpow2.f32 %v1936_v5  ;;  %v1938_v6 = vmul.f32 1.442695, %v1772_v63  ;;  %v1489_v8 = vsub.f32 %v3382_v13, %v1345_v33  ;;  %v1346_v53 = vmul.f32 2.0, %v547_v60  ;;  %v790_v50 = vpop.f32.mrf.mxu1 }
 0x156   :  { %v2675_v42 = vpop.eup %2674  ;;  %v1774_v37 = vmul.f32 -0.013888889, %v1630_v1  ;;  %v1631_v2 = vmax.f32 %v1487_v47, 0.0  ;;  %v551_v52 = vpop.f32.mrf.mxu0  ;;  %2692 = vpow2.f32 %v1916_v45  ;;  %v1755_v3 = vmul.f32 -0.013888889, %v1611_v61 }
 0x157   :  { %2194 = vst [vmem:[#allocation10 + $0x60] sm:$0xff] %v2675_v42  ;;  %2694 = vpow2.f32 %v1938_v6  ;;  %v1633_v20 = vmax.f32 %v1489_v8, 0.0  ;;  %v1490_v10 = vsub.f32 %v3386_v14, %v1346_v53  ;;  %v1348_v32 = vmul.f32 2.0, %v551_v52 }
 0x158   :  { %v2677_v55 = vpop.eup %2676  ;;  %v1942_v30 = vmul.f32 1.442695, %v1774_v37  ;;  %v1775_v48 = vmul.f32 -0.013888889, %v1631_v2  ;;  %v553_v29 = vpop.f32.mrf.mxu0  ;;  %v3727_v13 = vadd.f32 %v3284_v44, %v3636_v46  ;;  %v1904_v49 = vmul.f32 1.442695, %v1755_v3 }
 0x159   :  { %v2679_v59 = vpop.eup %2678  ;;  %2195 = vst [vmem:[#allocation10 + $0x68] sm:$0xff] %v2677_v55  ;;  %v1777_v11 = vmul.f32 -0.013888889, %v1633_v20  ;;  %v1634_v21 = vmax.f32 %v1490_v10, 0.0  ;;  %v1492_v56 = vsub.f32 %v3390_v15, %v1348_v32  ;;  %v1349_v62 = vmul.f32 2.0, %v553_v29 }
 0x15a   :  { %2696 = vpow2.f32 %v1942_v30  ;;  %v1944_v14 = vmul.f32 1.442695, %v1775_v48  ;;  %v555_v58 = vpop.f32.mrf.mxu0  ;;  %2190 = vst [vmem:[#allocation10 + $0x40] sm:$0xff] %v2679_v59  ;;  %v1338_v54 = vmul.f32 2.0, %v2535_v31  ;;  %v1332_v60 = vmul.f32 2.0, %v790_v50  ;;  %v2536_v59 = vpop.f32.mrf.mxu1 }
 0x15b   :  { %v2681_v35 = vpop.eup %2680  ;;  %v1948_v5 = vmul.f32 1.442695, %v1777_v11  ;;  %v1778_v63 = vmul.f32 -0.013888889, %v1634_v21  ;;  %v1636_v33 = vmax.f32 %v1492_v56, 0.0  ;;  %v1493_v46 = vsub.f32 %v3398_v18, %v1349_v62 }
 0x15c   :  { %2197 = vst [vmem:[#allocation10 + $0x78] sm:$0xff] %v2681_v35  ;;  %2698 = vpow2.f32 %v1944_v14  ;;  %v1351_v1 = vmul.f32 2.0, %v555_v58  ;;  %v557_v47 = vpop.f32.mrf.mxu0  ;;  %v1482_v15 = vsub.f32 %v3378_v12, %v1338_v54  ;;  %v1476_v48 = vsub.f32 %v3345_v0, %v1332_v60 }
 0x15d   :  { %v2683_v45 = vpop.eup %2682  ;;  %2700 = vpow2.f32 %v1948_v5  ;;  %v1950_v57 = vmul.f32 1.442695, %v1778_v63  ;;  %v1780_v6 = vmul.f32 -0.013888889, %v1636_v33  ;;  %v1637_v8 = vmax.f32 %v1493_v46, 0.0 }
 0x15e   :  { %v2685_v53 = vpop.eup %2684  ;;  %2198 = vst [vmem:[#allocation10 + $0x80] sm:$0xff] %v2683_v45  ;;  %v1495_v42 = vsub.f32 %v3402_v7, %v1351_v1  ;;  %v1352_v37 = vmul.f32 2.0, %v557_v47  ;;  %v561_v2 = vpop.f32.mrf.mxu0  ;;  %2702 = vpow2.f32 %v1904_v49  ;;  %v1626_v18 = vmax.f32 %v1482_v15, 0.0 }
 0x15f   :  { %v2687_v52 = vpop.eup %2686  ;;  %2200 = vst [vmem:[#allocation10 + $0x90] sm:$0xff] %v2685_v53  ;;  %2704 = vpow2.f32 %v1950_v57  ;;  %v1954_v61 = vmul.f32 1.442695, %v1780_v6  ;;  %v1781_v20 = vmul.f32 -0.013888889, %v1637_v8  ;;  %v1354_v12 = vmul.f32 2.0, %v561_v2  ;;  %v793_v15 = vpop.f32.mrf.mxu1 }
 0x160   :  { %v2689_v10 = vpop.eup %2688  ;;  %v1639_v32 = vmax.f32 %v1495_v42, 0.0  ;;  %v1496_v31 = vsub.f32 %v3406_v19, %v1352_v37  ;;  %v563_v55 = vpop.f32.mrf.mxu0  ;;  %2184 = vst [vmem:[#allocation10 + $0x10] sm:$0xff] %v2687_v52  ;;  %v1770_v30 = vmul.f32 -0.013888889, %v1626_v18  ;;  %v1620_v58 = vmax.f32 %v1476_v48, 0.0 }
 0x161   :  { %2201 = vst [vmem:[#allocation10 + $0x98] sm:$0xff] %v2689_v10  ;;  %2706 = vpow2.f32 %v1954_v61  ;;  %v1956_v7 = vmul.f32 1.442695, %v1781_v20  ;;  %v1498_v29 = vsub.f32 %v3417_v22, %v1354_v12  ;;  %v1355_v3 = vmul.f32 2.0, %v563_v55 }
 0x162   :  { %v2691_v11 = vpop.eup %2690  ;;  %v1783_v21 = vmul.f32 -0.013888889, %v1639_v32  ;;  %v1640_v56 = vmax.f32 %v1496_v31, 0.0  ;;  %v565_v62 = vpop.f32.mrf.mxu0  ;;  %v1934_v14 = vmul.f32 1.442695, %v1770_v30 }
 0x163   :  { %v2693_v49 = vpop.eup %2692  ;;  %2203 = vst [vmem:[#allocation10 + $0xa8] sm:$0xff] %v2691_v11  ;;  %2708 = vpow2.f32 %v1956_v7  ;;  %v1642_v19 = vmax.f32 %v1498_v29, 0.0  ;;  %v1499_v54 = vsub.f32 %v3421_v23, %v1355_v3  ;;  %v1357_v0 = vmul.f32 2.0, %v565_v62 }
 0x164   :  { %v2695_v35 = vpop.eup %2694  ;;  %v1960_v5 = vmul.f32 1.442695, %v1783_v21  ;;  %v1784_v63 = vmul.f32 -0.013888889, %v1640_v56  ;;  %v567_v33 = vpop.f32.mrf.mxu0  ;;  %2193 = vst [vmem:[#allocation10 + $0x58] sm:$0xff] %v2693_v49  ;;  %2710 = vpow2.f32 %v1934_v14  ;;  %v1341_v23 = vmul.f32 2.0, %v2536_v59 }
 0x165   :  { %v1764_v22 = vmul.f32 -0.013888889, %v1620_v58  ;;  %2204 = vst [vmem:[#allocation10 + $0xb0] sm:$0xff] %v2695_v35  ;;  %v1786_v46 = vmul.f32 -0.013888889, %v1642_v19  ;;  %v1643_v50 = vmax.f32 %v1499_v54, 0.0  ;;  %v1501_v1 = vsub.f32 %v3425_v25, %v1357_v0 }
 0x166   :  { %v1358_v47 = vmul.f32 2.0, %v567_v33  ;;  %2712 = vpow2.f32 %v1960_v5  ;;  %v1962_v60 = vmul.f32 1.442695, %v1784_v63  ;;  %v571_v45 = vpop.f32.mrf.mxu0  ;;  %v1485_v52 = vsub.f32 %v3394_v17, %v1341_v23 }
 0x167   :  { %v1922_v57 = vmul.f32 1.442695, %v1764_v22  ;;  %v2697_v6 = vpop.eup %2696  ;;  %v1966_v8 = vmul.f32 1.442695, %v1786_v46  ;;  %v1787_v53 = vmul.f32 -0.013888889, %v1643_v50  ;;  %v2539_v22 = vpop.f32.mrf.mxu1 }
 0x168   :  { %v1645_v42 = vmax.f32 %v1501_v1, 0.0  ;;  %v1502_v37 = vsub.f32 %v3433_v9, %v1358_v47  ;;  %2206 = vst [vmem:[#allocation10 + $0xc0] sm:$0xff] %v2697_v6  ;;  %2714 = vpow2.f32 %v1962_v60  ;;  %v1360_v2 = vmul.f32 2.0, %v571_v45  ;;  %v573_v18 = vpop.f32.mrf.mxu0  ;;  %v4085_v45 = vld [vmem:[#allocation18_spill] sm:$0xff] }
 0x169   :  { %v1335_v25 = vmul.f32 2.0, %v793_v15  ;;  %v2699_v61 = vpop.eup %2698  ;;  %2716 = vpow2.f32 %v1966_v8  ;;  %v1968_v20 = vmul.f32 1.442695, %v1787_v53  ;;  %v1361_v55 = vmul.f32 2.0, %v573_v18 }
 0x16a   :  { %v1789_v12 = vmul.f32 -0.013888889, %v1645_v42  ;;  %v1646_v10 = vmax.f32 %v1502_v37, 0.0  ;;  %v2701_v32 = vpop.eup %2700  ;;  %2207 = vst [vmem:[#allocation10 + $0xc8] sm:$0xff] %v2699_v61  ;;  %v1504_v31 = vsub.f32 %v3437_v27, %v1360_v2  ;;  %v575_v30 = vpop.f32.mrf.mxu0  ;;  %2718 = vpow2.f32 %v1922_v57 }
 0x16b   :  { %v1629_v9 = vmax.f32 %v1485_v52, 0.0  ;;  %v2703_v48 = vpop.eup %2702  ;;  %2209 = vst [vmem:[#allocation10 + $0xd8] sm:$0xff] %v2701_v32  ;;  %2720 = vpow2.f32 %v1968_v20  ;;  %v1363_v17 = vmul.f32 2.0, %v575_v30  ;;  %v1505_v11 = vsub.f32 %v3441_v16, %v1361_v55 }
 0x16c   :  { %v1972_v7 = vmul.f32 1.442695, %v1789_v12  ;;  %v1790_v29 = vmul.f32 -0.013888889, %v1646_v10  ;;  %v2705_v3 = vpop.eup %2704  ;;  %v1648_v59 = vmax.f32 %v1504_v31, 0.0  ;;  %v577_v21 = vpop.f32.mrf.mxu0  ;;  %2187 = vst [vmem:[#allocation10 + $0x28] sm:$0xff] %v2703_v48  ;;  %v1479_v62 = vsub.f32 %v3360_v4, %v1335_v25 }
 0x16d   :  { %v1773_v56 = vmul.f32 -0.013888889, %v1629_v9  ;;  %2210 = vst [vmem:[#allocation10 + $0xe0] sm:$0xff] %v2705_v3  ;;  %v1507_v14 = vsub.f32 %v3451_v28, %v1363_v17  ;;  %v1364_v58 = vmul.f32 2.0, %v577_v21  ;;  %v1649_v54 = vmax.f32 %v1505_v11, 0.0  ;;  %v806_v25 = vpop.f32.mrf.mxu1  ;;  %v4086_v12 = vld [vmem:[#allocation17_spill] sm:$0xff] }
 0x16e   :  { %2722 = vpow2.f32 %v1972_v7  ;;  %v1974_v27 = vmul.f32 1.442695, %v1790_v29  ;;  %v2707_v49 = vpop.eup %2706  ;;  %v1792_v19 = vmul.f32 -0.013888889, %v1648_v59  ;;  %v581_v0 = vpop.f32.mrf.mxu0  ;;  %v1623_v5 = vmax.f32 %v1479_v62, 0.0  ;;  %v4087_v7 = vld [vmem:[#allocation21_spill] sm:$0xff] }
 0x16f   :  { %v1940_v35 = vmul.f32 1.442695, %v1773_v56  ;;  %2212 = vst [vmem:[#allocation10 + $0xf0] sm:$0xff] %v2707_v49  ;;  %v1651_v16 = vmax.f32 %v1507_v14, 0.0  ;;  %v1508_v63 = vsub.f32 %v3455_v36, %v1364_v58  ;;  %v1366_v33 = vmul.f32 2.0, %v581_v0  ;;  %v4088_v14 = vld [vmem:[#allocation23_spill] sm:$0xff] }
 0x170   :  { %2724 = vpow2.f32 %v1974_v27  ;;  %v2709_v4 = vpop.eup %2708  ;;  %v1978_v46 = vmul.f32 1.442695, %v1792_v19  ;;  %v1793_v50 = vmul.f32 -0.013888889, %v1649_v54  ;;  %v583_v1 = vpop.f32.mrf.mxu0  ;;  %v1767_v28 = vmul.f32 -0.013888889, %v1623_v5 }
 0x171   :  { %2726 = vpow2.f32 %v1940_v35  ;;  %v2711_v47 = vpop.eup %2710  ;;  %2213 = vst [vmem:[#allocation10 + $0xf8] sm:$0xff] %v2709_v4  ;;  %v1795_v15 = vmul.f32 -0.013888889, %v1651_v16  ;;  %v1652_v60 = vmax.f32 %v1508_v63, 0.0  ;;  %v1510_v57 = vsub.f32 %v4085_v45, %v1366_v33  ;;  %v4089_v54 = vld [vmem:[#allocation15_spill] sm:$0xff]  ;;  %v2540_v35 = vpop.f32.mrf.mxu1  ;;  %v4090_v16 = vld [vmem:[#allocation24_spill] sm:$0xff] }
 0x172   :  { %v1367_v23 = vmul.f32 2.0, %v583_v1  ;;  %2728 = vpow2.f32 %v1978_v46  ;;  %v1980_v6 = vmul.f32 1.442695, %v1793_v50  ;;  %v585_v8 = vpop.f32.mrf.mxu0  ;;  %2202 = vst [vmem:[#allocation10 + $0xa0] sm:$0xff] %v2711_v47  ;;  %v1928_v36 = vmul.f32 1.442695, %v1767_v28 }
 0x173   :  { %v1350_v53 = vmul.f32 2.0, %v2539_v22  ;;  %v2713_v42 = vpop.eup %2712  ;;  %v1984_v37 = vmul.f32 1.442695, %v1795_v15  ;;  %v1796_v2 = vmul.f32 -0.013888889, %v1652_v60  ;;  %v1654_v18 = vmax.f32 %v1510_v57, 0.0 }
 0x174   :  { %v1511_v52 = vsub.f32 %v3471_v26, %v1367_v23  ;;  %2215 = vst [vmem:[#allocation10 + $0x108] sm:$0xff] %v2713_v42  ;;  %2730 = vpow2.f32 %v1980_v6  ;;  %v1369_v61 = vmul.f32 2.0, %v585_v8  ;;  %v587_v20 = vpop.f32.mrf.mxu0  ;;  %v1344_v32 = vmul.f32 2.0, %v806_v25  ;;  %v4091_v15 = vld [vmem:[#allocation25_spill] sm:$0xff] }
 0x175   :  { %v1494_v10 = vsub.f32 %v4086_v12, %v1350_v53  ;;  %v2715_v31 = vpop.eup %2714  ;;  %2732 = vpow2.f32 %v1984_v37  ;;  %v1986_v55 = vmul.f32 1.442695, %v1796_v2  ;;  %v1798_v30 = vmul.f32 -0.013888889, %v1654_v18  ;;  %v809_v53 = vpop.f32.mrf.mxu1  ;;  %v4092_v18 = vld [vmem:[#allocation27_spill] sm:$0xff] }
 0x176   :  { %v1655_v9 = vmax.f32 %v1511_v52, 0.0  ;;  %v2717_v48 = vpop.eup %2716  ;;  %2216 = vst [vmem:[#allocation10 + $0x110] sm:$0xff] %v2715_v31  ;;  %v1513_v29 = vsub.f32 %v4087_v7, %v1369_v61  ;;  %v1370_v17 = vmul.f32 2.0, %v587_v20  ;;  %v591_v3 = vpop.f32.mrf.mxu0  ;;  %2734 = vpow2.f32 %v1928_v36 }
 0x177   :  { %v1638_v26 = vmax.f32 %v1494_v10, 0.0  ;;  %v2719_v59 = vpop.eup %2718  ;;  %2218 = vst [vmem:[#allocation10 + $0x120] sm:$0xff] %v2717_v48  ;;  %2736 = vpow2.f32 %v1986_v55  ;;  %v1990_v11 = vmul.f32 1.442695, %v1798_v30  ;;  %v1372_v56 = vmul.f32 2.0, %v591_v3 }
 0x178   :  { %v1799_v21 = vmul.f32 -0.013888889, %v1655_v9  ;;  %v2721_v62 = vpop.eup %2720  ;;  %v1657_v27 = vmax.f32 %v1513_v29, 0.0  ;;  %v1514_v58 = vsub.f32 %v4088_v14, %v1370_v17  ;;  %v593_v49 = vpop.f32.mrf.mxu0  ;;  %2196 = vst [vmem:[#allocation10 + $0x70] sm:$0xff] %v2719_v59  ;;  %v1488_v0 = vsub.f32 %v4089_v54, %v1344_v32  ;;  %v4093_v9 = vld [vmem:[#allocation28_spill] sm:$0xff]  ;;  %v4094_v17 = vld [vmem:[#allocation19_spill] sm:$0xff] }
 0x179   :  { %v1782_v19 = vmul.f32 -0.013888889, %v1638_v26  ;;  %2219 = vst [vmem:[#allocation10 + $0x128] sm:$0xff] %v2721_v62  ;;  %2738 = vpow2.f32 %v1990_v11  ;;  %v1516_v63 = vsub.f32 %v4090_v16, %v1372_v56  ;;  %v1373_v33 = vmul.f32 2.0, %v593_v49  ;;  %v2543_v59 = vpop.f32.mrf.mxu1  ;;  %v4095_v14 = vld [vmem:[#allocation29_spill] sm:$0xff] }
 0x17a   :  { %v1992_v5 = vmul.f32 1.442695, %v1799_v21  ;;  %v1801_v4 = vmul.f32 -0.013888889, %v1657_v27  ;;  %v1658_v46 = vmax.f32 %v1514_v58, 0.0  ;;  %v595_v50 = vpop.f32.mrf.mxu0  ;;  %v1632_v28 = vmax.f32 %v1488_v0, 0.0 }
 0x17b   :  { %v2723_v22 = vpop.eup %2722  ;;  %v1958_v1 = vmul.f32 1.442695, %v1782_v19  ;;  %v1660_v47 = vmax.f32 %v1516_v63, 0.0  ;;  %v1517_v60 = vsub.f32 %v4091_v15, %v1373_v33  ;;  %v1375_v45 = vmul.f32 2.0, %v595_v50 }
 0x17c   :  { %2221 = vst [vmem:[#allocation10 + $0x138] sm:$0xff] %v2723_v22  ;;  %2740 = vpow2.f32 %v1992_v5  ;;  %v1996_v23 = vmul.f32 1.442695, %v1801_v4  ;;  %v1802_v6 = vmul.f32 -0.013888889, %v1658_v46  ;;  %v597_v8 = vpop.f32.mrf.mxu0  ;;  %v1353_v10 = vmul.f32 2.0, %v2540_v35 }
 0x17d   :  { %v2725_v57 = vpop.eup %2724  ;;  %2742 = vpow2.f32 %v1958_v1  ;;  %v1776_v36 = vmul.f32 -0.013888889, %v1632_v28  ;;  %v1804_v37 = vmul.f32 -0.013888889, %v1660_v47  ;;  %v1661_v2 = vmax.f32 %v1517_v60, 0.0  ;;  %v4096_v22 = vld [vmem:[#allocation32_spill] sm:$0xff]  ;;  %v822_v47 = vpop.f32.mrf.mxu1 }
 0x17e   :  { %v2727_v42 = vpop.eup %2726  ;;  %2222 = vst [vmem:[#allocation10 + $0x140] sm:$0xff] %v2725_v57  ;;  %v1519_v52 = vsub.f32 %v4092_v18, %v1375_v45  ;;  %v1376_v25 = vmul.f32 2.0, %v597_v8  ;;  %2744 = vpow2.f32 %v1996_v23  ;;  %v1998_v61 = vmul.f32 1.442695, %v1802_v6  ;;  %v601_v20 = vpop.f32.mrf.mxu0  ;;  %v4097_v1 = vld [vmem:[#allocation16_spill] sm:$0xff]  ;;  %v4098_v60 = vld [vmem:[#allocation33_spill] sm:$0xff] }
 0x17f   :  { %2205 = vst [vmem:[#allocation10 + $0xb8] sm:$0xff] %v2727_v42  ;;  %v1946_v12 = vmul.f32 1.442695, %v1776_v36  ;;  %v2729_v32 = vpop.eup %2728  ;;  %v2002_v31 = vmul.f32 1.442695, %v1804_v37  ;;  %v1378_v7 = vmul.f32 2.0, %v601_v20  ;;  %v1497_v3 = vsub.f32 %v4094_v17, %v1353_v10 }
 0x180   :  { %v1805_v55 = vmul.f32 -0.013888889, %v1661_v2  ;;  %v1663_v30 = vmax.f32 %v1519_v52, 0.0  ;;  %v1520_v48 = vsub.f32 %v4093_v9, %v1376_v25  ;;  %2224 = vst [vmem:[#allocation10 + $0x150] sm:$0xff] %v2729_v32  ;;  %2746 = vpow2.f32 %v1998_v61  ;;  %v603_v29 = vpop.f32.mrf.mxu0  ;;  %v4099_v2 = vld [vmem:[#allocation35_spill] sm:$0xff]  ;;  %v3761_v32 = vpop.f32.mrf.mxu1  ;;  %v4100_v9 = vld [vmem:[#allocation36_spill] sm:$0xff] }
 0x181   :  { %v1347_v26 = vmul.f32 2.0, %v809_v53  ;;  %v2731_v11 = vpop.eup %2730  ;;  %2748 = vpow2.f32 %v2002_v31  ;;  %v1522_v58 = vsub.f32 %v4095_v14, %v1378_v7  ;;  %v1379_v49 = vmul.f32 2.0, %v603_v29 }
 0x182   :  { %v2004_v21 = vmul.f32 1.442695, %v1805_v55  ;;  %v1807_v56 = vmul.f32 -0.013888889, %v1663_v30  ;;  %v1664_v62 = vmax.f32 %v1520_v48, 0.0  ;;  %v2733_v27 = vpop.eup %2732  ;;  %2225 = vst [vmem:[#allocation10 + $0x158] sm:$0xff] %v2731_v11  ;;  %v605_v19 = vpop.f32.mrf.mxu0  ;;  %2750 = vpow2.f32 %v1946_v12 }
 0x183   :  { %v1641_v54 = vmax.f32 %v1497_v3, 0.0  ;;  %v2735_v0 = vpop.eup %2734  ;;  %2227 = vst [vmem:[#allocation10 + $0x168] sm:$0xff] %v2733_v27  ;;  %v1381_v16 = vmul.f32 2.0, %v605_v19  ;;  %v1666_v33 = vmax.f32 %v1522_v58, 0.0  ;;  %v1523_v4 = vsub.f32 %v4096_v22, %v1379_v49  ;;  %v4101_v27 = vld [vmem:[#allocation37_spill] sm:$0xff]  ;;  %v4102_v19 = vld [vmem:[#allocation26_spill] sm:$0xff] }
 0x184   :  { %2752 = vpow2.f32 %v2004_v21  ;;  %v2008_v35 = vmul.f32 1.442695, %v1807_v56  ;;  %v1808_v5 = vmul.f32 -0.013888889, %v1664_v62  ;;  %v2737_v63 = vpop.eup %2736  ;;  %v607_v46 = vpop.f32.mrf.mxu0  ;;  %2199 = vst [vmem:[#allocation10 + $0x88] sm:$0xff] %v2735_v0  ;;  %v1491_v28 = vsub.f32 %v4097_v1, %v1347_v26  ;;  %v4103_v22 = vld [vmem:[#allocation39_spill] sm:$0xff] }
 0x185   :  { %v1785_v50 = vmul.f32 -0.013888889, %v1641_v54  ;;  %2228 = vst [vmem:[#allocation10 + $0x170] sm:$0xff] %v2737_v63  ;;  %v1525_v45 = vsub.f32 %v4098_v60, %v1381_v16  ;;  %v1382_v57 = vmul.f32 2.0, %v607_v46  ;;  %v1810_v6 = vmul.f32 -0.013888889, %v1666_v33 }
 0x186   :  { %2754 = vpow2.f32 %v2008_v35  ;;  %v2010_v15 = vmul.f32 1.442695, %v1808_v5  ;;  %v2739_v23 = vpop.eup %2738  ;;  %v1667_v8 = vmax.f32 %v1523_v4, 0.0  ;;  %v611_v36 = vpop.f32.mrf.mxu0  ;;  %v1635_v42 = vmax.f32 %v1491_v28, 0.0 }
 0x187   :  { %v1964_v53 = vmul.f32 1.442695, %v1785_v50  ;;  %2230 = vst [vmem:[#allocation10 + $0x180] sm:$0xff] %v2739_v23  ;;  %v1669_v37 = vmax.f32 %v1525_v45, 0.0  ;;  %v1526_v18 = vsub.f32 %v4099_v2, %v1382_v57  ;;  %v1384_v52 = vmul.f32 2.0, %v611_v36  ;;  %v3766_v35 = vpop.f32.mrf.mxu1  ;;  %v4104_v23 = vld [vmem:[#allocation40_spill] sm:$0xff] }
 0x188   :  { %2756 = vpow2.f32 %v2010_v15  ;;  %v2014_v61 = vmul.f32 1.442695, %v1810_v6  ;;  %v1811_v20 = vmul.f32 -0.013888889, %v1667_v8  ;;  %v613_v12 = vpop.f32.mrf.mxu0  ;;  %v1779_v10 = vmul.f32 -0.013888889, %v1635_v42 }
 0x189   :  { %v2741_v25 = vpop.eup %2740  ;;  %2758 = vpow2.f32 %v1964_v53  ;;  %v1813_v55 = vmul.f32 -0.013888889, %v1669_v37  ;;  %v1670_v30 = vmax.f32 %v1526_v18, 0.0  ;;  %v1528_v48 = vsub.f32 %v4100_v9, %v1384_v52  ;;  %v4105_v53 = vld [vmem:[#allocation20_spill] sm:$0xff]  ;;  %v3771_v37 = vpop.f32.mrf.mxu1  ;;  %v4106_v18 = vld [vmem:[#allocation41_spill] sm:$0xff]  ;;  %v4107_v9 = vld [vmem:[#allocation43_spill] sm:$0xff] }
 0x18a   :  { %v2743_v31 = vpop.eup %2742  ;;  %2231 = vst [vmem:[#allocation10 + $0x188] sm:$0xff] %v2741_v25  ;;  %v1385_v7 = vmul.f32 2.0, %v613_v12  ;;  %2760 = vpow2.f32 %v2014_v61  ;;  %v2016_v29 = vmul.f32 1.442695, %v1811_v20  ;;  %v615_v17 = vpop.f32.mrf.mxu0  ;;  %v1952_v3 = vmul.f32 1.442695, %v1779_v10 }
 0x18b   :  { %2214 = vst [vmem:[#allocation10 + $0x100] sm:$0xff] %v2743_v31  ;;  %v1362_v26 = vmul.f32 2.0, %v2543_v59  ;;  %v2745_v11 = vpop.eup %2744  ;;  %v2020_v21 = vmul.f32 1.442695, %v1813_v55  ;;  %v1814_v56 = vmul.f32 -0.013888889, %v1670_v30 }
 0x18c   :  { %v1672_v62 = vmax.f32 %v1528_v48, 0.0  ;;  %v1529_v14 = vsub.f32 %v4101_v27, %v1385_v7  ;;  %2233 = vst [vmem:[#allocation10 + $0x198] sm:$0xff] %v2745_v11  ;;  %2762 = vpow2.f32 %v2016_v29  ;;  %v1387_v58 = vmul.f32 2.0, %v615_v17  ;;  %v617_v49 = vpop.f32.mrf.mxu0 }
 0x18d   :  { %v1506_v54 = vsub.f32 %v4102_v19, %v1362_v26  ;;  %v1356_v0 = vmul.f32 2.0, %v822_v47  ;;  %v2747_v5 = vpop.eup %2746  ;;  %2764 = vpow2.f32 %v2020_v21  ;;  %v2022_v16 = vmul.f32 1.442695, %v1814_v56  ;;  %v3775_v21 = vpop.f32.mrf.mxu1 }
 0x18e   :  { %v1816_v63 = vmul.f32 -0.013888889, %v1672_v62  ;;  %v1673_v59 = vmax.f32 %v1529_v14, 0.0  ;;  %v2749_v33 = vpop.eup %2748  ;;  %2234 = vst [vmem:[#allocation10 + $0x1a0] sm:$0xff] %v2747_v5  ;;  %v1531_v4 = vsub.f32 %v4103_v22, %v1387_v58  ;;  %v1388_v46 = vmul.f32 2.0, %v617_v49  ;;  %v621_v50 = vpop.f32.mrf.mxu0  ;;  %v4108_v14 = vld [vmem:[#allocation44_spill] sm:$0xff] }
 0x18f   :  { %2766 = vpow2.f32 %v1952_v3  ;;  %v1650_v1 = vmax.f32 %v1506_v54, 0.0  ;;  %v2751_v28 = vpop.eup %2750  ;;  %2236 = vst [vmem:[#allocation10 + $0x1b0] sm:$0xff] %v2749_v33  ;;  %v1390_v60 = vmul.f32 2.0, %v621_v50  ;;  %v1500_v42 = vsub.f32 %v4105_v53, %v1356_v0  ;;  %v4109_v22 = vld [vmem:[#allocation47_spill] sm:$0xff] }
 0x190   :  { %2768 = vpow2.f32 %v2022_v16  ;;  %v2026_v15 = vmul.f32 1.442695, %v1816_v63  ;;  %v1817_v47 = vmul.f32 -0.013888889, %v1673_v59  ;;  %v1675_v57 = vmax.f32 %v1531_v4, 0.0  ;;  %v623_v8 = vpop.f32.mrf.mxu0  ;;  %2208 = vst [vmem:[#allocation10 + $0xd0] sm:$0xff] %v2751_v28 }
 0x191   :  { %v2753_v45 = vpop.eup %2752  ;;  %v1532_v6 = vsub.f32 %v4104_v23, %v1388_v46  ;;  %v1794_v36 = vmul.f32 -0.013888889, %v1650_v1  ;;  %v1534_v52 = vsub.f32 %v4106_v18, %v1390_v60  ;;  %v1391_v25 = vmul.f32 2.0, %v623_v8  ;;  %v4110_v1 = vld [vmem:[#allocation30_spill] sm:$0xff] }
 0x192   :  { %2237 = vst [vmem:[#allocation10 + $0x1b8] sm:$0xff] %v2753_v45  ;;  %2770 = vpow2.f32 %v2026_v15  ;;  %v2028_v2 = vmul.f32 1.442695, %v1817_v47  ;;  %v1819_v20 = vmul.f32 -0.013888889, %v1675_v57  ;;  %v625_v10 = vpop.f32.mrf.mxu0  ;;  %v1644_v55 = vmax.f32 %v1500_v42, 0.0  ;;  %v3782_v47 = vpop.f32.mrf.mxu1 }
 0x193   :  { %v2755_v61 = vpop.eup %2754  ;;  %v1676_v12 = vmax.f32 %v1532_v6, 0.0  ;;  %v1982_v31 = vmul.f32 1.442695, %v1794_v36  ;;  %v1678_v30 = vmax.f32 %v1534_v52, 0.0  ;;  %v1535_v48 = vsub.f32 %v4107_v9, %v1391_v25  ;;  %v4111_v6 = vld [vmem:[#allocation48_spill] sm:$0xff] }
 0x194   :  { %2239 = vst [vmem:[#allocation10 + $0x1c8] sm:$0xff] %v2755_v61  ;;  %2772 = vpow2.f32 %v2028_v2  ;;  %v1393_v7 = vmul.f32 2.0, %v625_v10  ;;  %v2032_v17 = vmul.f32 1.442695, %v1819_v20  ;;  %v627_v26 = vpop.f32.mrf.mxu0  ;;  %v1788_v11 = vmul.f32 -0.013888889, %v1644_v55  ;;  %v3787_v9 = vpop.f32.mrf.mxu1 }
 0x195   :  { %v2757_v29 = vpop.eup %2756  ;;  %v1820_v3 = vmul.f32 -0.013888889, %v1676_v12  ;;  %2774 = vpow2.f32 %v1982_v31  ;;  %v1822_v62 = vmul.f32 -0.013888889, %v1678_v30  ;;  %v1679_v27 = vmax.f32 %v1535_v48, 0.0  ;;  %v4112_v20 = vld [vmem:[#allocation49_spill] sm:$0xff] }
 0x196   :  { %v2759_v56 = vpop.eup %2758  ;;  %2240 = vst [vmem:[#allocation10 + $0x1d0] sm:$0xff] %v2757_v29  ;;  %v1537_v58 = vsub.f32 %v4108_v14, %v1393_v7  ;;  %v1394_v49 = vmul.f32 2.0, %v627_v26  ;;  %2776 = vpow2.f32 %v2032_v17  ;;  %v631_v54 = vpop.f32.mrf.mxu0  ;;  %v1970_v0 = vmul.f32 1.442695, %v1788_v11  ;;  %v4113_v55 = vld [vmem:[#allocation22_spill] sm:$0xff] }
 0x197   :  { %v2034_v19 = vmul.f32 1.442695, %v1820_v3  ;;  %2217 = vst [vmem:[#allocation10 + $0x118] sm:$0xff] %v2759_v56  ;;  %v1365_v5 = vmul.f32 2.0, %v3761_v32  ;;  %v2761_v16 = vpop.eup %2760  ;;  %v2038_v63 = vmul.f32 1.442695, %v1822_v62 }
 0x198   :  { %v1823_v59 = vmul.f32 -0.013888889, %v1679_v27  ;;  %v1681_v33 = vmax.f32 %v1537_v58, 0.0  ;;  %v1538_v4 = vsub.f32 %v4109_v22, %v1394_v49  ;;  %2242 = vst [vmem:[#allocation10 + $0x1e0] sm:$0xff] %v2761_v16  ;;  %v1396_v46 = vmul.f32 2.0, %v631_v54  ;;  %v633_v50 = vpop.f32.mrf.mxu0  ;;  %v4114_v7 = vld [vmem:[#allocation50_spill] sm:$0xff] }
 0x199   :  { %2778 = vpow2.f32 %v2034_v19  ;;  %v1509_v28 = vsub.f32 %v4110_v1, %v1365_v5  ;;  %v1359_v15 = vmul.f32 2.0, %v3766_v35  ;;  %v2763_v60 = vpop.eup %2762  ;;  %v1397_v36 = vmul.f32 2.0, %v633_v50  ;;  %v4115_v58 = vld [vmem:[#allocation53_spill] sm:$0xff] }
 0x19a   :  { %2780 = vpow2.f32 %v2038_v63  ;;  %v2040_v45 = vmul.f32 1.442695, %v1823_v59  ;;  %v1825_v32 = vmul.f32 -0.013888889, %v1681_v33  ;;  %v1682_v57 = vmax.f32 %v1538_v4, 0.0  ;;  %v2765_v23 = vpop.eup %2764  ;;  %2243 = vst [vmem:[#allocation10 + $0x1e8] sm:$0xff] %v2763_v60  ;;  %v635_v53 = vpop.f32.mrf.mxu0 }
 0x19b   :  { %v1540_v8 = vsub.f32 %v4111_v6, %v1396_v46  ;;  %2782 = vpow2.f32 %v1970_v0  ;;  %v1653_v42 = vmax.f32 %v1509_v28, 0.0  ;;  %2245 = vst [vmem:[#allocation10 + $0x1f8] sm:$0xff] %v2765_v23  ;;  %v1399_v52 = vmul.f32 2.0, %v635_v53  ;;  %v3791_v59 = vpop.f32.mrf.mxu1  ;;  %v4116_v46 = vld [vmem:[#allocation54_spill] sm:$0xff] }
 0x19c   :  { %v2767_v2 = vpop.eup %2766  ;;  %2784 = vpow2.f32 %v2040_v45  ;;  %v2044_v18 = vmul.f32 1.442695, %v1825_v32  ;;  %v1826_v35 = vmul.f32 -0.013888889, %v1682_v57  ;;  %v1541_v12 = vsub.f32 %v4112_v20, %v1397_v36  ;;  %v637_v10 = vpop.f32.mrf.mxu0 }
 0x19d   :  { %v2769_v25 = vpop.eup %2768  ;;  %v1684_v61 = vmax.f32 %v1540_v8, 0.0  ;;  %2211 = vst [vmem:[#allocation10 + $0xe8] sm:$0xff] %v2767_v2  ;;  %v1797_v31 = vmul.f32 -0.013888889, %v1653_v42  ;;  %v1503_v30 = vsub.f32 %v4113_v55, %v1359_v15  ;;  %v1543_v29 = vsub.f32 %v4114_v7, %v1399_v52  ;;  %v4117_v8 = vld [vmem:[#allocation55_spill] sm:$0xff]  ;;  %v4118_v2 = vld [vmem:[#allocation38_spill] sm:$0xff]  ;;  %v3798_v52 = vpop.f32.mrf.mxu1 }
 0x19e   :  { %2246 = vst [vmem:[#allocation10 + $0x200] sm:$0xff] %v2769_v25  ;;  %2786 = vpow2.f32 %v2044_v18  ;;  %v2046_v48 = vmul.f32 1.442695, %v1826_v35  ;;  %v1400_v17 = vmul.f32 2.0, %v637_v10  ;;  %v1685_v11 = vmax.f32 %v1541_v12, 0.0  ;;  %v641_v56 = vpop.f32.mrf.mxu0  ;;  %v4119_v10 = vld [vmem:[#allocation57_spill] sm:$0xff] }
 0x19f   :  { %v2771_v3 = vpop.eup %2770  ;;  %v1828_v26 = vmul.f32 -0.013888889, %v1684_v61  ;;  %v1988_v62 = vmul.f32 1.442695, %v1797_v31  ;;  %v1647_v27 = vmax.f32 %v1503_v30, 0.0  ;;  %v1687_v14 = vmax.f32 %v1543_v29, 0.0 }
 0x1a0   :  { %2248 = vst [vmem:[#allocation10 + $0x210] sm:$0xff] %v2771_v3  ;;  %2788 = vpow2.f32 %v2046_v48  ;;  %v1544_v49 = vsub.f32 %v4115_v58, %v1400_v17  ;;  %v1402_v19 = vmul.f32 2.0, %v641_v56  ;;  %v1829_v5 = vmul.f32 -0.013888889, %v1685_v11  ;;  %v643_v16 = vpop.f32.mrf.mxu0  ;;  %v4120_v11 = vld [vmem:[#allocation58_spill] sm:$0xff] }
 0x1a1   :  { %v2773_v54 = vpop.eup %2772  ;;  %v2050_v0 = vmul.f32 1.442695, %v1828_v26  ;;  %2790 = vpow2.f32 %v1988_v62  ;;  %v1791_v63 = vmul.f32 -0.013888889, %v1647_v27  ;;  %v1831_v22 = vmul.f32 -0.013888889, %v1687_v14 }
 0x1a2   :  { %v2775_v33 = vpop.eup %2774  ;;  %2249 = vst [vmem:[#allocation10 + $0x218] sm:$0xff] %v2773_v54  ;;  %v1688_v4 = vmax.f32 %v1544_v49, 0.0  ;;  %v1546_v50 = vsub.f32 %v4116_v46, %v1402_v19  ;;  %v1403_v1 = vmul.f32 2.0, %v643_v16  ;;  %v2052_v28 = vmul.f32 1.442695, %v1829_v5  ;;  %v645_v15 = vpop.f32.mrf.mxu0  ;;  %v4121_v14 = vld [vmem:[#allocation31_spill] sm:$0xff] }
 0x1a3   :  { %2792 = vpow2.f32 %v2050_v0  ;;  %2226 = vst [vmem:[#allocation10 + $0x160] sm:$0xff] %v2775_v33  ;;  %v1976_v60 = vmul.f32 1.442695, %v1791_v63  ;;  %v1374_v45 = vmul.f32 2.0, %v3771_v37  ;;  %v2777_v32 = vpop.eup %2776  ;;  %v2056_v57 = vmul.f32 1.442695, %v1831_v22  ;;  %v3803_v49 = vpop.f32.mrf.mxu1 }
 0x1a4   :  { %v1832_v23 = vmul.f32 -0.013888889, %v1688_v4  ;;  %v1690_v6 = vmax.f32 %v1546_v50, 0.0  ;;  %v1547_v36 = vsub.f32 %v4117_v8, %v1403_v1  ;;  %2251 = vst [vmem:[#allocation10 + $0x228] sm:$0xff] %v2777_v32  ;;  %2794 = vpow2.f32 %v2052_v28  ;;  %v647_v42 = vpop.f32.mrf.mxu0  ;;  %v4122_v54 = vld [vmem:[#allocation59_spill] sm:$0xff] }
 0x1a5   :  { %v1405_v53 = vmul.f32 2.0, %v645_v15  ;;  %v1518_v18 = vsub.f32 %v4118_v2, %v1374_v45  ;;  %v1368_v35 = vmul.f32 2.0, %v3775_v21  ;;  %2796 = vpow2.f32 %v2056_v57 }
 0x1a6   :  { %v2779_v25 = vpop.eup %2778  ;;  %v2058_v61 = vmul.f32 1.442695, %v1832_v23  ;;  %v1834_v37 = vmul.f32 -0.013888889, %v1690_v6  ;;  %v1691_v20 = vmax.f32 %v1547_v36, 0.0  ;;  %v1406_v55 = vmul.f32 2.0, %v647_v42  ;;  %v651_v30 = vpop.f32.mrf.mxu0 }
 0x1a7   :  { %v2781_v12 = vpop.eup %2780  ;;  %2252 = vst [vmem:[#allocation10 + $0x230] sm:$0xff] %v2779_v25  ;;  %v1549_v31 = vsub.f32 %v4119_v10, %v1405_v53  ;;  %2798 = vpow2.f32 %v1976_v60  ;;  %v1662_v48 = vmax.f32 %v1518_v18, 0.0  ;;  %v1408_v17 = vmul.f32 2.0, %v651_v30  ;;  %v3807_v23 = vpop.f32.mrf.mxu1 }
 0x1a8   :  { %v2783_v7 = vpop.eup %2782  ;;  %2254 = vst [vmem:[#allocation10 + $0x240] sm:$0xff] %v2781_v12  ;;  %2800 = vpow2.f32 %v2058_v61  ;;  %v2062_v29 = vmul.f32 1.442695, %v1834_v37  ;;  %v1835_v21 = vmul.f32 -0.013888889, %v1691_v20  ;;  %v1550_v56 = vsub.f32 %v4120_v11, %v1406_v55  ;;  %v653_v62 = vpop.f32.mrf.mxu0  ;;  %v4123_v12 = vld [vmem:[#allocation63_spill] sm:$0xff] }
 0x1a9   :  { %v2785_v3 = vpop.eup %2784  ;;  %v1693_v26 = vmax.f32 %v1549_v31, 0.0  ;;  %2220 = vst [vmem:[#allocation10 + $0x130] sm:$0xff] %v2783_v7  ;;  %v1806_v27 = vmul.f32 -0.013888889, %v1662_v48  ;;  %v1512_v58 = vsub.f32 %v4121_v14, %v1368_v35  ;;  %v1552_v0 = vsub.f32 %v4122_v54, %v1408_v17  ;;  %v4124_v31 = vld [vmem:[#allocation42_spill] sm:$0xff]  ;;  %v3814_v7 = vpop.f32.mrf.mxu1  ;;  %v4125_v11 = vld [vmem:[#allocation64_spill] sm:$0xff] }
 0x1aa   :  { %2255 = vst [vmem:[#allocation10 + $0x248] sm:$0xff] %v2785_v3  ;;  %2802 = vpow2.f32 %v2062_v29  ;;  %v2064_v19 = vmul.f32 1.442695, %v1835_v21  ;;  %v1409_v5 = vmul.f32 2.0, %v653_v62  ;;  %v1694_v33 = vmax.f32 %v1550_v56, 0.0  ;;  %v655_v4 = vpop.f32.mrf.mxu0  ;;  %v4126_v62 = vld [vmem:[#allocation34_spill] sm:$0xff] }
 0x1ab   :  { %v2787_v16 = vpop.eup %2786  ;;  %v1837_v63 = vmul.f32 -0.013888889, %v1693_v26  ;;  %v2006_v22 = vmul.f32 1.442695, %v1806_v27  ;;  %v1656_v46 = vmax.f32 %v1512_v58, 0.0  ;;  %v1696_v50 = vmax.f32 %v1552_v0, 0.0 }
 0x1ac   :  { %2257 = vst [vmem:[#allocation10 + $0x258] sm:$0xff] %v2787_v16  ;;  %2804 = vpow2.f32 %v2064_v19  ;;  %v1553_v1 = vsub.f32 %v3647_v38, %v1409_v5  ;;  %v1411_v28 = vmul.f32 2.0, %v655_v4  ;;  %v1838_v45 = vmul.f32 -0.013888889, %v1694_v33  ;;  %v657_v57 = vpop.f32.mrf.mxu0  ;;  %v3819_v4 = vpop.f32.mrf.mxu1 }
 0x1ad   :  { %v2789_v15 = vpop.eup %2788  ;;  %v2068_v60 = vmul.f32 1.442695, %v1837_v63  ;;  %2806 = vpow2.f32 %v2006_v22  ;;  %v1800_v32 = vmul.f32 -0.013888889, %v1656_v46  ;;  %v1840_v8 = vmul.f32 -0.013888889, %v1696_v50 }
 0x1ae   :  { %v2791_v6 = vpop.eup %2790  ;;  %2258 = vst [vmem:[#allocation10 + $0x260] sm:$0xff] %v2789_v15  ;;  %v1697_v36 = vmax.f32 %v1553_v1, 0.0  ;;  %v1555_v53 = vsub.f32 %v3651_v43, %v1411_v28  ;;  %v1412_v42 = vmul.f32 2.0, %v657_v57  ;;  %v2070_v2 = vmul.f32 1.442695, %v1838_v45  ;;  %v661_v35 = vpop.f32.mrf.mxu0 }
 0x1af   :  { %2808 = vpow2.f32 %v2068_v60  ;;  %2229 = vst [vmem:[#allocation10 + $0x178] sm:$0xff] %v2791_v6  ;;  %v1994_v38 = vmul.f32 1.442695, %v1800_v32  ;;  %v1377_v18 = vmul.f32 2.0, %v3782_v47  ;;  %v2074_v61 = vmul.f32 1.442695, %v1840_v8 }
 0x1b0   :  { %v2793_v25 = vpop.eup %2792  ;;  %v1841_v37 = vmul.f32 -0.013888889, %v1697_v36  ;;  %v1699_v20 = vmax.f32 %v1555_v53, 0.0  ;;  %v1556_v10 = vsub.f32 %v4123_v12, %v1412_v42  ;;  %2810 = vpow2.f32 %v2070_v2  ;;  %v663_v48 = vpop.f32.mrf.mxu0  ;;  %v4127_v32 = vld [vmem:[#allocation51_spill] sm:$0xff] }
 0x1b1   :  { %2260 = vst [vmem:[#allocation10 + $0x270] sm:$0xff] %v2793_v25  ;;  %v1521_v55 = vsub.f32 %v4124_v31, %v1377_v18  ;;  %v1414_v30 = vmul.f32 2.0, %v661_v35  ;;  %v1371_v43 = vmul.f32 2.0, %v3787_v9  ;;  %v2795_v29 = vpop.eup %2794  ;;  %2812 = vpow2.f32 %v2074_v61  ;;  %v4128_v25 = vld [vmem:[#allocation66_spill] sm:$0xff] }
 0x1b2   :  { %v2076_v47 = vmul.f32 1.442695, %v1841_v37  ;;  %v1843_v21 = vmul.f32 -0.013888889, %v1699_v20  ;;  %v1700_v17 = vmax.f32 %v1556_v10, 0.0  ;;  %v2797_v3 = vpop.eup %2796  ;;  %2261 = vst [vmem:[#allocation10 + $0x278] sm:$0xff] %v2795_v29  ;;  %2814 = vpow2.f32 %v1994_v38  ;;  %v665_v14 = vpop.f32.mrf.mxu0 }
 0x1b3   :  { %v1665_v26 = vmax.f32 %v1521_v55, 0.0  ;;  %v1558_v56 = vsub.f32 %v4125_v11, %v1414_v30  ;;  %v1515_v27 = vsub.f32 %v4126_v62, %v1371_v43  ;;  %2263 = vst [vmem:[#allocation10 + $0x288] sm:$0xff] %v2797_v3  ;;  %v1415_v54 = vmul.f32 2.0, %v663_v48  ;;  %v3828_v38 = vpop.f32.mrf.mxu1  ;;  %v4129_v37 = vld [vmem:[#allocation45_spill] sm:$0xff]  ;;  %v4131_v3 = vld [vmem:[#allocation52_spill] sm:$0xff] }
 0x1b4   :  { %v2799_v58 = vpop.eup %2798  ;;  %2816 = vpow2.f32 %v2076_v47  ;;  %v2080_v9 = vmul.f32 1.442695, %v1843_v21  ;;  %v1844_v19 = vmul.f32 -0.013888889, %v1700_v17  ;;  %v1386_v33 = vmul.f32 2.0, %v3791_v59  ;;  %v667_v22 = vpop.f32.mrf.mxu0  ;;  %v4130_v21 = vld [vmem:[#allocation67_spill] sm:$0xff] }
 0x1b5   :  { %v2801_v0 = vpop.eup %2800  ;;  %2223 = vst [vmem:[#allocation10 + $0x148] sm:$0xff] %v2799_v58  ;;  %v1809_v5 = vmul.f32 -0.013888889, %v1665_v26  ;;  %v1702_v16 = vmax.f32 %v1558_v56, 0.0  ;;  %v1659_v63 = vmax.f32 %v1515_v27, 0.0  ;;  %v1559_v50 = vsub.f32 %v3674_v34, %v1415_v54  ;;  %v3839_v62 = vpop.f32.mrf.mxu1 }
 0x1b6   :  { %2264 = vst [vmem:[#allocation10 + $0x290] sm:$0xff] %v2801_v0  ;;  %2818 = vpow2.f32 %v2080_v9  ;;  %v2082_v46 = vmul.f32 1.442695, %v1844_v19  ;;  %v3824_v1 = vadd.f32 %v3284_v44, %v3665_v24  ;;  %v1530_v57 = vsub.f32 %v4127_v32, %v1386_v33  ;;  %v671_v6 = vpop.f32.mrf.mxu0  ;;  %v1132_v0 = vpop.xlane.xlu1 %1131 }
 0x1b7   :  { %v2803_v28 = vpop.eup %2802  ;;  %v2012_v15 = vmul.f32 1.442695, %v1809_v5  ;;  %v1846_v60 = vmul.f32 -0.013888889, %v1702_v16  ;;  %v1803_v45 = vmul.f32 -0.013888889, %v1659_v63  ;;  %v3835_v31 = vadd.f32 %v3284_v44, %v3676_v39 }
 0x1b8   :  { %2266 = vst [vmem:[#allocation10 + $0x2a0] sm:$0xff] %v2803_v28  ;;  %2820 = vpow2.f32 %v2082_v46  ;;  %v1703_v59 = vmax.f32 %v1559_v50, 0.0  ;;  %v1417_v8 = vmul.f32 2.0, %v665_v14  ;;  %v1380_v36 = vmul.f32 2.0, %v3798_v52  ;;  %v673_v24 = vpop.f32.mrf.mxu0 }
 0x1b9   :  { %v2805_v53 = vpop.eup %2804  ;;  %2822 = vpow2.f32 %v2012_v15  ;;  %v2086_v34 = vmul.f32 1.442695, %v1846_v60  ;;  %v2000_v42 = vmul.f32 1.442695, %v1803_v45  ;;  %v1674_v2 = vmax.f32 %v1530_v57, 0.0 }
 0x1ba   :  { %v2807_v18 = vpop.eup %2806  ;;  %2267 = vst [vmem:[#allocation10 + $0x2a8] sm:$0xff] %v2805_v53  ;;  %v1847_v35 = vmul.f32 -0.013888889, %v1703_v59  ;;  %v1561_v61 = vsub.f32 %v4128_v25, %v1417_v8  ;;  %v1524_v20 = vsub.f32 %v4129_v37, %v1380_v36  ;;  %v1418_v12 = vmul.f32 2.0, %v667_v22  ;;  %v675_v55 = vpop.f32.mrf.mxu0  ;;  %v4132_v22 = vld [vmem:[#allocation46_spill] sm:$0xff] }
 0x1bb   :  { %2238 = vst [vmem:[#allocation10 + $0x1c0] sm:$0xff] %v2807_v18  ;;  %2824 = vpow2.f32 %v2086_v34  ;;  %v1818_v10 = vmul.f32 -0.013888889, %v1674_v2  ;;  %v1389_v52 = vmul.f32 2.0, %v3803_v49  ;;  %v1420_v11 = vmul.f32 2.0, %v671_v6 }
 0x1bc   :  { %v2809_v30 = vpop.eup %2808  ;;  %2826 = vpow2.f32 %v2000_v42  ;;  %v2088_v43 = vmul.f32 1.442695, %v1847_v35  ;;  %v1705_v48 = vmax.f32 %v1561_v61, 0.0  ;;  %v1668_v29 = vmax.f32 %v1524_v20, 0.0  ;;  %v677_v56 = vpop.f32.mrf.mxu0  ;;  %v4134_v35 = vld [vmem:[#allocation14_spill] sm:$0xff] }
 0x1bd   :  { %2269 = vst [vmem:[#allocation10 + $0x2b8] sm:$0xff] %v2809_v30  ;;  %v2030_v47 = vmul.f32 1.442695, %v1818_v10  ;;  %v1562_v17 = vsub.f32 %v4130_v21, %v1418_v12  ;;  %v1533_v26 = vsub.f32 %v4131_v3, %v1389_v52  ;;  %v2811_v49 = vpop.eup %2810  ;;  %v1383_v14 = vmul.f32 2.0, %v3807_v23 }
 0x1be   :  { %2828 = vpow2.f32 %v2088_v43  ;;  %v1849_v39 = vmul.f32 -0.013888889, %v1705_v48  ;;  %v1812_v27 = vmul.f32 -0.013888889, %v1668_v29  ;;  %v2813_v58 = vpop.eup %2812  ;;  %2270 = vst [vmem:[#allocation10 + $0x2c0] sm:$0xff] %v2811_v49  ;;  %v1564_v54 = vsub.f32 %v3694_v51, %v1420_v11  ;;  %v3843_v5 = vpop.f32.mrf.mxu0 }
 0x1bf   :  { %2830 = vpow2.f32 %v2030_v47  ;;  %v1706_v9 = vmax.f32 %v1562_v17, 0.0  ;;  %v1677_v19 = vmax.f32 %v1533_v26, 0.0  ;;  %v2815_v16 = vpop.eup %2814  ;;  %2272 = vst [vmem:[#allocation10 + $0x2d0] sm:$0xff] %v2813_v58  ;;  %v1527_v46 = vsub.f32 %v4132_v22, %v1383_v14  ;;  %v3849_v51 = vpop.f32.mrf.mxu1  ;;  %v4135_v14 = vld [vmem:[#allocation56_spill] sm:$0xff] }
 0x1c0   :  { %v2092_v63 = vmul.f32 1.442695, %v1849_v39  ;;  %v2018_v33 = vmul.f32 1.442695, %v1812_v27  ;;  %v1421_v50 = vmul.f32 2.0, %v673_v24  ;;  %2232 = vst [vmem:[#allocation10 + $0x190] sm:$0xff] %v2815_v16  ;;  %v3847_v32 = vpop.f32.mrf.mxu0  ;;  %v1279_v59 = vadd.f32 %v3280_v41, %v1132_v0  ;;  %v1134_v29 = vpop.xlane.xlu0 %1133 }
 0x1c1   :  { %v2817_v28 = vpop.eup %2816  ;;  %v1850_v23 = vmul.f32 -0.013888889, %v1706_v9  ;;  %v1821_v15 = vmul.f32 -0.013888889, %v1677_v19  ;;  %v1708_v60 = vmax.f32 %v1564_v54, 0.0  ;;  %v1398_v45 = vmul.f32 2.0, %v3814_v7  ;;  %v3860_v12 = vpop.f32.mrf.mxu1 }
 0x1c2   :  { %2273 = vst [vmem:[#allocation10 + $0x2d8] sm:$0xff] %v2817_v28  ;;  %2832 = vpow2.f32 %v2092_v63  ;;  %v1671_v57 = vmax.f32 %v1527_v46, 0.0  ;;  %v1565_v6 = vsub.f32 %v3703_v40, %v1421_v50  ;;  %v3853_v42 = vpop.f32.mrf.mxu0  ;;  %v4133_v24 = vld [vmem:[#allocation61_spill] sm:$0xff]  ;;  %v1280_v25 = vadd.f32 %v4134_v35, %v1132_v0 }
 0x1c3   :  { %v2819_v8 = vpop.eup %2818  ;;  %2834 = vpow2.f32 %v2018_v33  ;;  %v2094_v36 = vmul.f32 1.442695, %v1850_v23  ;;  %v2036_v53 = vmul.f32 1.442695, %v1821_v15  ;;  %v1852_v34 = vmul.f32 -0.013888889, %v1708_v60  ;;  %v3870_v54 = vpop.f32.mrf.mxu1 }
 0x1c4   :  { %2275 = vst [vmem:[#allocation10 + $0x2e8] sm:$0xff] %v2819_v8  ;;  %v1815_v7 = vmul.f32 -0.013888889, %v1671_v57  ;;  %v1709_v2 = vmax.f32 %v1565_v6, 0.0  ;;  %v1542_v18 = vsub.f32 %v4133_v24, %v1398_v45  ;;  %v3858_v40 = vadd.f32 %v3284_v44, %v1132_v0  ;;  %v3862_v10 = vpop.f32.mrf.mxu0  ;;  %v4136_v0 = vld [vmem:[#allocation62_spill] sm:$0xff] }
 0x1c5   :  { %v2821_v61 = vpop.eup %2820  ;;  %2836 = vpow2.f32 %v2094_v36  ;;  %v2098_v37 = vmul.f32 1.442695, %v1852_v34  ;;  %v1423_v20 = vmul.f32 2.0, %v675_v55  ;;  %v1392_v21 = vmul.f32 2.0, %v3819_v4 }
 0x1c6   :  { %v2823_v52 = vpop.eup %2822  ;;  %2276 = vst [vmem:[#allocation10 + $0x2f0] sm:$0xff] %v2821_v61  ;;  %2838 = vpow2.f32 %v2036_v53  ;;  %v2024_v30 = vmul.f32 1.442695, %v1815_v7  ;;  %v1853_v43 = vmul.f32 -0.013888889, %v1709_v2  ;;  %v1686_v48 = vmax.f32 %v1542_v18, 0.0  ;;  %v3865_v3 = vpop.f32.mrf.mxu0 }
 0x1c7   :  { %2241 = vst [vmem:[#allocation10 + $0x1d8] sm:$0xff] %v2823_v52  ;;  %2840 = vpow2.f32 %v2098_v37  ;;  %v1567_v47 = vsub.f32 %v1279_v59, %v1423_v20  ;;  %v1424_v17 = vmul.f32 2.0, %v677_v56  ;;  %v1401_v49 = vmul.f32 2.0, %v3828_v38  ;;  %v1136_v38 = vpop.xlane.xlu1 %1135  ;;  %v3884_v53 = vpop.f32.mrf.mxu1  ;;  %v4137_v2 = vld [vmem:[#allocation60_spill] sm:$0xff] }
 0x1c8   :  { %v2825_v55 = vpop.eup %2824  ;;  %2842 = vpow2.f32 %v2024_v30  ;;  %v2100_v26 = vmul.f32 1.442695, %v1853_v43  ;;  %v1830_v11 = vmul.f32 -0.013888889, %v1686_v48  ;;  %v1536_v58 = vsub.f32 %v4135_v14, %v1392_v21  ;;  %v3872_v4 = vpop.f32.mrf.mxu0 }
 0x1c9   :  { %v2827_v39 = vpop.eup %2826  ;;  %2278 = vst [vmem:[#allocation10 + $0x300] sm:$0xff] %v2825_v55  ;;  %v1711_v27 = vmax.f32 %v1567_v47, 0.0  ;;  %v1568_v9 = vsub.f32 %v1280_v25, %v1424_v17  ;;  %v1282_v19 = vadd.f32 %v3280_v41, %v1134_v29  ;;  %v1545_v16 = vsub.f32 %v4136_v0, %v1401_v49  ;;  %v1138_v17 = vpop.xlane.xlu0 %1137 }
 0x1ca   :  { %2235 = vst [vmem:[#allocation10 + $0x1a8] sm:$0xff] %v2827_v39  ;;  %2844 = vpow2.f32 %v2100_v26  ;;  %v2054_v56 = vmul.f32 1.442695, %v1830_v11  ;;  %v1283_v63 = vadd.f32 %v4134_v35, %v1134_v29  ;;  %v1680_v46 = vmax.f32 %v1536_v58, 0.0  ;;  %v3881_v57 = vpop.f32.mrf.mxu0  ;;  %v2563_v55 = vpop.f32.mrf.mxu1 }
 0x1cb   :  { %v2829_v33 = vpop.eup %2828  ;;  %v1855_v22 = vmul.f32 -0.013888889, %v1711_v27  ;;  %v1712_v50 = vmax.f32 %v1568_v9, 0.0  ;;  %v3877_v28 = vadd.f32 %v3284_v44, %v1134_v29  ;;  %v1689_v15 = vmax.f32 %v1545_v16, 0.0  ;;  %v4138_v29 = vld [vmem:[#allocation69_spill] sm:$0xff] }
 0x1cc   :  { %v2831_v23 = vpop.eup %2830  ;;  %2279 = vst [vmem:[#allocation10 + $0x308] sm:$0xff] %v2829_v33  ;;  %2846 = vpow2.f32 %v2054_v56  ;;  %v1426_v60 = vmul.f32 2.0, %v3843_v5  ;;  %v1395_v45 = vmul.f32 2.0, %v3839_v62  ;;  %v1824_v59 = vmul.f32 -0.013888889, %v1680_v46  ;;  %v3889_v48 = vpop.f32.mrf.mxu0  ;;  %v4139_v46 = vld [vmem:[#allocation65_spill] sm:$0xff] }
 0x1cd   :  { %2250 = vst [vmem:[#allocation10 + $0x220] sm:$0xff] %v2831_v23  ;;  %v2104_v6 = vmul.f32 1.442695, %v1855_v22  ;;  %v1856_v8 = vmul.f32 -0.013888889, %v1712_v50  ;;  %v1285_v36 = vadd.f32 %v3280_v41, %v1136_v38  ;;  %v1427_v18 = vmul.f32 2.0, %v3847_v32 }
 0x1ce   :  { %v1833_v34 = vmul.f32 -0.013888889, %v1689_v15  ;;  %v1570_v7 = vsub.f32 %v1282_v19, %v1426_v60  ;;  %v1539_v24 = vsub.f32 %v4137_v2, %v1395_v45  ;;  %v2042_v5 = vmul.f32 1.442695, %v1824_v59 }
 0x1cf   :  { %v2833_v25 = vpop.eup %2832  ;;  %2848 = vpow2.f32 %v2104_v6  ;;  %v2106_v62 = vmul.f32 1.442695, %v1856_v8  ;;  %v1410_v61 = vmul.f32 2.0, %v3849_v51  ;;  %v1571_v43 = vsub.f32 %v1283_v63, %v1427_v18  ;;  %v3899_v63 = vpop.f32.mrf.mxu0 }
 0x1d0   :  { %v2835_v37 = vpop.eup %2834  ;;  %2281 = vst [vmem:[#allocation10 + $0x318] sm:$0xff] %v2833_v25  ;;  %v2060_v20 = vmul.f32 1.442695, %v1833_v34  ;;  %v1714_v52 = vmax.f32 %v1570_v7, 0.0  ;;  %v1683_v30 = vmax.f32 %v1539_v24, 0.0  ;;  %2850 = vpow2.f32 %v2042_v5  ;;  %v4140_v34 = vld [vmem:[#allocation70_spill] sm:$0xff] }
 0x1d1   :  { %2244 = vst [vmem:[#allocation10 + $0x1f0] sm:$0xff] %v2835_v37  ;;  %v1554_v47 = vsub.f32 %v4138_v29, %v1410_v61  ;;  %v1286_v32 = vadd.f32 %v4134_v35, %v1136_v38  ;;  %v3894_v21 = vadd.f32 %v3284_v44, %v1136_v38  ;;  %2852 = vpow2.f32 %v2106_v62  ;;  %v3911_v2 = vpop.f32.mrf.mxu0 }
 0x1d2   :  { %v2837_v51 = vpop.eup %2836  ;;  %v1858_v26 = vmul.f32 -0.013888889, %v1714_v52  ;;  %v1827_v11 = vmul.f32 -0.013888889, %v1683_v30  ;;  %v1715_v49 = vmax.f32 %v1571_v43, 0.0  ;;  %2854 = vpow2.f32 %v2060_v20  ;;  %v1140_v52 = vpop.xlane.xlu1 %1139 }
 0x1d3   :  { %v2839_v39 = vpop.eup %2838  ;;  %2282 = vst [vmem:[#allocation10 + $0x320] sm:$0xff] %v2837_v51  ;;  %v1698_v27 = vmax.f32 %v1554_v47, 0.0  ;;  %v1429_v14 = vmul.f32 2.0, %v3853_v42  ;;  %v1404_v58 = vmul.f32 2.0, %v3860_v12  ;;  %v1288_v16 = vadd.f32 %v3280_v41, %v1138_v17  ;;  %v3903_v42 = vpop.f32.mrf.mxu1 }
 0x1d4   :  { %v2841_v9 = vpop.eup %2840  ;;  %2253 = vst [vmem:[#allocation10 + $0x238] sm:$0xff] %v2839_v39  ;;  %v2110_v19 = vmul.f32 1.442695, %v1858_v26  ;;  %v2048_v56 = vmul.f32 1.442695, %v1827_v11  ;;  %v1430_v23 = vmul.f32 2.0, %v3862_v10  ;;  %v1289_v60 = vadd.f32 %v4134_v35, %v1138_v17 }
 0x1d5   :  { %v1859_v0 = vmul.f32 -0.013888889, %v1715_v49  ;;  %v2843_v38 = vpop.eup %2842  ;;  %2284 = vst [vmem:[#allocation10 + $0x330] sm:$0xff] %v2841_v9  ;;  %v1842_v33 = vmul.f32 -0.013888889, %v1698_v27  ;;  %v1573_v22 = vsub.f32 %v1285_v36, %v1429_v14  ;;  %v1548_v50 = vsub.f32 %v4139_v46, %v1404_v58  ;;  %v2564_v5 = vpop.f32.mrf.mxu1  ;;  %v4141_v26 = vld [vmem:[#allocation68_spill] sm:$0xff] }
 0x1d6   :  { %2247 = vst [vmem:[#allocation10 + $0x208] sm:$0xff] %v2843_v38  ;;  %2856 = vpow2.f32 %v2110_v19  ;;  %v1413_v15 = vmul.f32 2.0, %v3870_v54  ;;  %v1574_v36 = vsub.f32 %v1286_v32, %v1430_v23  ;;  %v3909_v10 = vadd.f32 %v3284_v44, %v1138_v17 }
 0x1d7   :  { %v2112_v12 = vmul.f32 1.442695, %v1859_v0  ;;  %v2845_v45 = vpop.eup %2844  ;;  %2858 = vpow2.f32 %v2048_v56  ;;  %v2078_v6 = vmul.f32 1.442695, %v1842_v33  ;;  %v1717_v59 = vmax.f32 %v1573_v22, 0.0  ;;  %v905_v27 = vpop.f32.mrf.mxu1 }
 0x1d8   :  { %v1692_v8 = vmax.f32 %v1548_v50, 0.0  ;;  %2285 = vst [vmem:[#allocation10 + $0x338] sm:$0xff] %v2845_v45  ;;  %v1557_v7 = vsub.f32 %v4140_v34, %v1413_v15  ;;  %v1432_v25 = vmul.f32 2.0, %v3865_v3  ;;  %v1718_v62 = vmax.f32 %v1574_v36, 0.0  ;;  %v3917_v3 = vpop.f32.mrf.mxu0  ;;  %v1142_v36 = vpop.xlane.xlu0 %1141 }
 0x1d9   :  { %2860 = vpow2.f32 %v2112_v12  ;;  %v2847_v24 = vpop.eup %2846  ;;  %v1861_v54 = vmul.f32 -0.013888889, %v1717_v59  ;;  %v1407_v37 = vmul.f32 2.0, %v3884_v53  ;;  %v1433_v20 = vmul.f32 2.0, %v3872_v4 }
 0x1da   :  { %2862 = vpow2.f32 %v2078_v6  ;;  %v1836_v18 = vmul.f32 -0.013888889, %v1692_v8  ;;  %2262 = vst [vmem:[#allocation10 + $0x280] sm:$0xff] %v2847_v24  ;;  %v1701_v61 = vmax.f32 %v1557_v7, 0.0  ;;  %v1576_v29 = vsub.f32 %v1288_v16, %v1432_v25  ;;  %v3926_v50 = vpop.f32.mrf.mxu0 }
 0x1db   :  { %v2116_v30 = vmul.f32 1.442695, %v1861_v54  ;;  %v1422_v47 = vmul.f32 2.0, %v2563_v55  ;;  %v1862_v17 = vmul.f32 -0.013888889, %v1718_v62  ;;  %v1551_v11 = vsub.f32 %v4141_v26, %v1407_v37 }
 0x1dc   :  { %v2066_v43 = vmul.f32 1.442695, %v1836_v18  ;;  %v2849_v32 = vpop.eup %2848  ;;  %v1845_v51 = vmul.f32 -0.013888889, %v1701_v61  ;;  %v1577_v49 = vsub.f32 %v1289_v60, %v1433_v20  ;;  %v1720_v39 = vmax.f32 %v1576_v29, 0.0  ;;  %v2567_v60 = vpop.f32.mrf.mxu1 }
 0x1dd   :  { %2287 = vst [vmem:[#allocation10 + $0x348] sm:$0xff] %v2849_v32  ;;  %2864 = vpow2.f32 %v2116_v30  ;;  %v1566_v53 = vsub.f32 %v3835_v31, %v1422_v47  ;;  %v1291_v4 = vadd.f32 %v3280_v41, %v1140_v52  ;;  %v2851_v14 = vpop.eup %2850  ;;  %v2118_v58 = vmul.f32 1.442695, %v1862_v17  ;;  %v3931_v61 = vpop.f32.mrf.mxu0 }
 0x1de   :  { %2866 = vpow2.f32 %v2066_v43  ;;  %v2084_v55 = vmul.f32 1.442695, %v1845_v51  ;;  %v1695_v9 = vmax.f32 %v1551_v11, 0.0  ;;  %v2853_v19 = vpop.eup %2852  ;;  %2256 = vst [vmem:[#allocation10 + $0x250] sm:$0xff] %v2851_v14  ;;  %v1864_v56 = vmul.f32 -0.013888889, %v1720_v39 }
 0x1df   :  { %v1721_v0 = vmax.f32 %v1577_v49, 0.0  ;;  %v1710_v16 = vmax.f32 %v1566_v53, 0.0  ;;  %v1292_v38 = vadd.f32 %v4134_v35, %v1140_v52  ;;  %v2855_v33 = vpop.eup %2854  ;;  %2288 = vst [vmem:[#allocation10 + $0x350] sm:$0xff] %v2853_v19  ;;  %2868 = vpow2.f32 %v2118_v58  ;;  %v3941_v39 = vpop.f32.mrf.mxu0 }
 0x1e0   :  { %v1839_v22 = vmul.f32 -0.013888889, %v1695_v9  ;;  %v3923_v31 = vadd.f32 %v3284_v44, %v1140_v52  ;;  %v1435_v46 = vmul.f32 2.0, %v3881_v57  ;;  %2265 = vst [vmem:[#allocation10 + $0x298] sm:$0xff] %v2855_v33  ;;  %2870 = vpow2.f32 %v2084_v55  ;;  %v1144_v52 = vpop.xlane.xlu1 %1143 }
 0x1e1   :  { %v2122_v23 = vmul.f32 1.442695, %v1864_v56  ;;  %v1865_v12 = vmul.f32 -0.013888889, %v1721_v0  ;;  %v1854_v15 = vmul.f32 -0.013888889, %v1710_v16  ;;  %v1295_v20 = vadd.f32 %v4134_v35, %v1142_v36 }
 0x1e2   :  { %v2072_v45 = vmul.f32 1.442695, %v1839_v22  ;;  %v1579_v6 = vsub.f32 %v1291_v4, %v1435_v46  ;;  %v1416_v59 = vmul.f32 2.0, %v3903_v42  ;;  %v1436_v8 = vmul.f32 2.0, %v3889_v48  ;;  %v1146_v46 = vpop.xlane.xlu0 %1145 }
 0x1e3   :  { %v2857_v34 = vpop.eup %2856  ;;  %2872 = vpow2.f32 %v2122_v23  ;;  %v2124_v7 = vmul.f32 1.442695, %v1865_v12  ;;  %v2102_v24 = vmul.f32 1.442695, %v1854_v15  ;;  %v1425_v57 = vmul.f32 2.0, %v2564_v5  ;;  %v918_v5 = vpop.f32.mrf.mxu1 }
 0x1e4   :  { %v2859_v54 = vpop.eup %2858  ;;  %2290 = vst [vmem:[#allocation10 + $0x360] sm:$0xff] %v2857_v34  ;;  %2874 = vpow2.f32 %v2072_v45  ;;  %v1723_v18 = vmax.f32 %v1579_v6, 0.0  ;;  %v1560_v25 = vsub.f32 %v3727_v13, %v1416_v59  ;;  %v1580_v62 = vsub.f32 %v1292_v38, %v1436_v8  ;;  %v3950_v23 = vpop.f32.mrf.mxu0 }
 0x1e5   :  { %2259 = vst [vmem:[#allocation10 + $0x268] sm:$0xff] %v2859_v54  ;;  %2876 = vpow2.f32 %v2124_v7  ;;  %v1569_v48 = vsub.f32 %v3858_v40, %v1425_v57  ;;  %v1294_v42 = vadd.f32 %v3280_v41, %v1142_v36  ;;  %v3937_v32 = vadd.f32 %v3284_v44, %v1142_v36  ;;  %v2568_v55 = vpop.f32.mrf.mxu1 }
 0x1e6   :  { %v2861_v37 = vpop.eup %2860  ;;  %2878 = vpow2.f32 %v2102_v24  ;;  %v1867_v43 = vmul.f32 -0.013888889, %v1723_v18  ;;  %v1704_v29 = vmax.f32 %v1560_v25, 0.0  ;;  %v1724_v13 = vmax.f32 %v1580_v62, 0.0 }
 0x1e7   :  { %v2863_v30 = vpop.eup %2862  ;;  %2291 = vst [vmem:[#allocation10 + $0x368] sm:$0xff] %v2861_v37  ;;  %v1713_v47 = vmax.f32 %v1569_v48, 0.0  ;;  %v1438_v17 = vmul.f32 2.0, %v3899_v63  ;;  %v1419_v40 = vmul.f32 2.0, %v905_v27  ;;  %v1297_v49 = vadd.f32 %v3280_v41, %v1144_v52  ;;  %v921_v6 = vpop.f32.mrf.mxu1 }
 0x1e8   :  { %2274 = vst [vmem:[#allocation10 + $0x2e0] sm:$0xff] %v2863_v30  ;;  %v2128_v51 = vmul.f32 1.442695, %v1867_v43  ;;  %v1848_v26 = vmul.f32 -0.013888889, %v1704_v29  ;;  %v1439_v58 = vmul.f32 2.0, %v3911_v2  ;;  %v3948_v2 = vadd.f32 %v3284_v44, %v1144_v52  ;;  %v3956_v48 = vpop.f32.mrf.mxu0 }
 0x1e9   :  { %v1868_v11 = vmul.f32 -0.013888889, %v1724_v13  ;;  %v1857_v53 = vmul.f32 -0.013888889, %v1713_v47  ;;  %v1582_v4 = vsub.f32 %v1294_v42, %v1438_v17  ;;  %v1563_v14 = vsub.f32 %v3824_v1, %v1419_v40 }
 0x1ea   :  { %v2865_v9 = vpop.eup %2864  ;;  %2880 = vpow2.f32 %v2128_v51  ;;  %v2090_v19 = vmul.f32 1.442695, %v1848_v26  ;;  %v1434_v63 = vmul.f32 2.0, %v2567_v60  ;;  %v1583_v33 = vsub.f32 %v1295_v20, %v1439_v58  ;;  %v1148_v58 = vpop.xlane.xlu1 %1147 }
 0x1eb   :  { %v2130_v56 = vmul.f32 1.442695, %v1868_v11  ;;  %v2867_v27 = vpop.eup %2866  ;;  %2293 = vst [vmem:[#allocation10 + $0x378] sm:$0xff] %v2865_v9  ;;  %v2108_v0 = vmul.f32 1.442695, %v1857_v53  ;;  %v1726_v16 = vmax.f32 %v1582_v4, 0.0  ;;  %v1298_v1 = vadd.f32 %v4134_v35, %v1144_v52  ;;  %v3962_v11 = vpop.f32.mrf.mxu0 }
 0x1ec   :  { %v1707_v38 = vmax.f32 %v1563_v14, 0.0  ;;  %2268 = vst [vmem:[#allocation10 + $0x2b0] sm:$0xff] %v2867_v27  ;;  %2882 = vpow2.f32 %v2090_v19  ;;  %v1578_v22 = vsub.f32 %v3909_v10, %v1434_v63  ;;  %v2869_v12 = vpop.eup %2868  ;;  %v1727_v45 = vmax.f32 %v1583_v33, 0.0 }
 0x1ed   :  { %2884 = vpow2.f32 %v2130_v56  ;;  %v1870_v15 = vmul.f32 -0.013888889, %v1726_v16  ;;  %v2871_v59 = vpop.eup %2870  ;;  %2294 = vst [vmem:[#allocation10 + $0x380] sm:$0xff] %v2869_v12  ;;  %v1441_v10 = vmul.f32 2.0, %v3917_v3  ;;  %v1428_v36 = vmul.f32 2.0, %v918_v5  ;;  %v2571_v5 = vpop.f32.mrf.mxu1 }
 0x1ee   :  { %v1851_v60 = vmul.f32 -0.013888889, %v1707_v38  ;;  %2886 = vpow2.f32 %v2108_v0  ;;  %v1722_v8 = vmax.f32 %v1578_v22, 0.0  ;;  %2277 = vst [vmem:[#allocation10 + $0x2f8] sm:$0xff] %v2871_v59  ;;  %v1871_v24 = vmul.f32 -0.013888889, %v1727_v45 }
 0x1ef   :  { %v2134_v34 = vmul.f32 1.442695, %v1870_v15  ;;  %v1300_v57 = vadd.f32 %v3280_v41, %v1146_v46  ;;  %v1585_v25 = vsub.f32 %v1297_v49, %v1441_v10  ;;  %v1572_v62 = vsub.f32 %v3877_v28, %v1428_v36 }
 0x1f0   :  { %v2096_v7 = vmul.f32 1.442695, %v1851_v60  ;;  %v2873_v54 = vpop.eup %2872  ;;  %v1866_v18 = vmul.f32 -0.013888889, %v1722_v8  ;;  %v1442_v37 = vmul.f32 2.0, %v3926_v50  ;;  %v1437_v20 = vmul.f32 2.0, %v2568_v55  ;;  %v934_v55 = vpop.f32.mrf.mxu1 }
 0x1f1   :  { %v2875_v42 = vpop.eup %2874  ;;  %2296 = vst [vmem:[#allocation10 + $0x390] sm:$0xff] %v2873_v54  ;;  %2888 = vpow2.f32 %v2134_v34  ;;  %v2136_v3 = vmul.f32 1.442695, %v1871_v24  ;;  %v1301_v52 = vadd.f32 %v4134_v35, %v1146_v46  ;;  %v1729_v29 = vmax.f32 %v1585_v25, 0.0 }
 0x1f2   :  { %v2877_v30 = vpop.eup %2876  ;;  %2271 = vst [vmem:[#allocation10 + $0x2c8] sm:$0xff] %v2875_v42  ;;  %2890 = vpow2.f32 %v2096_v7  ;;  %v2126_v43 = vmul.f32 1.442695, %v1866_v18  ;;  %v1716_v13 = vmax.f32 %v1572_v62, 0.0  ;;  %v1586_v28 = vsub.f32 %v1298_v1, %v1442_v37  ;;  %v3967_v1 = vpop.f32.mrf.mxu0 }
 0x1f3   :  { %v2879_v47 = vpop.eup %2878  ;;  %2297 = vst [vmem:[#allocation10 + $0x398] sm:$0xff] %v2877_v30  ;;  %2892 = vpow2.f32 %v2136_v3  ;;  %v1581_v50 = vsub.f32 %v3923_v31, %v1437_v20  ;;  %v1302_v17 = vadd.f32 %v3284_v44, %v1146_v46  ;;  %v1873_v40 = vmul.f32 -0.013888889, %v1729_v29  ;;  %v2572_v60 = vpop.f32.mrf.mxu1 }
 0x1f4   :  { %2286 = vst [vmem:[#allocation10 + $0x340] sm:$0xff] %v2879_v47  ;;  %2894 = vpow2.f32 %v2126_v43  ;;  %v1860_v51 = vmul.f32 -0.013888889, %v1716_v13  ;;  %v1444_v26 = vmul.f32 2.0, %v3931_v61  ;;  %v1730_v49 = vmax.f32 %v1586_v28, 0.0  ;;  %v3972_v18 = vpop.f32.mrf.mxu0  ;;  %v1150_v3 = vpop.xlane.xlu0 %1149 }
 0x1f5   :  { %v1725_v53 = vmax.f32 %v1581_v50, 0.0  ;;  %v1431_v4 = vmul.f32 2.0, %v921_v6  ;;  %v1445_v14 = vmul.f32 2.0, %v3941_v39  ;;  %v2140_v9 = vmul.f32 1.442695, %v1873_v40  ;;  %v937_v20 = vpop.f32.mrf.mxu1  ;;  %v1152_v40 = vpop.xlane.xlu1 %1151 }
 0x1f6   :  { %v2114_v19 = vmul.f32 1.442695, %v1860_v51  ;;  %v1588_v31 = vsub.f32 %v1300_v57, %v1444_v26  ;;  %v1446_v56 = vmul.f32 2.0, %v2571_v5  ;;  %v1874_v27 = vmul.f32 -0.013888889, %v1730_v49  ;;  %v727_v51 = vpop.f32.mrf.mxu0 }
 0x1f7   :  { %v2881_v63 = vpop.eup %2880  ;;  %v1869_v0 = vmul.f32 -0.013888889, %v1725_v53  ;;  %v1575_v16 = vsub.f32 %v3894_v21, %v1431_v4  ;;  %v1589_v38 = vsub.f32 %v1301_v52, %v1445_v14  ;;  %2896 = vpow2.f32 %v2140_v9  ;;  %v2575_v14 = vpop.f32.mrf.mxu1 }
 0x1f8   :  { %2299 = vst [vmem:[#allocation10 + $0x3a8] sm:$0xff] %v2881_v63  ;;  %v1732_v61 = vmax.f32 %v1588_v31, 0.0  ;;  %v1590_v33 = vsub.f32 %v1302_v17, %v1446_v56  ;;  %v1303_v22 = vadd.f32 %v3280_v41, %v1148_v58  ;;  %2898 = vpow2.f32 %v2114_v19 }
 0x1f9   :  { %v2883_v39 = vpop.eup %2882  ;;  %v2142_v46 = vmul.f32 1.442695, %v1874_v27  ;;  %v2132_v12 = vmul.f32 1.442695, %v1869_v0  ;;  %v1719_v15 = vmax.f32 %v1575_v16, 0.0  ;;  %v1733_v59 = vmax.f32 %v1589_v38, 0.0 }
 0x1fa   :  { %v2885_v45 = vpop.eup %2884  ;;  %2280 = vst [vmem:[#allocation10 + $0x310] sm:$0xff] %v2883_v39  ;;  %v1876_v6 = vmul.f32 -0.013888889, %v1732_v61  ;;  %v1734_v21 = vmax.f32 %v1590_v33, 0.0  ;;  %v1304_v8 = vadd.f32 %v4134_v35, %v1148_v58  ;;  %v1305_v34 = vadd.f32 %v3284_v44, %v1148_v58  ;;  %v3985_v61 = vpop.f32.mrf.mxu0 }
 0x1fb   :  { %v2887_v10 = vpop.eup %2886  ;;  %2300 = vst [vmem:[#allocation10 + $0x3b0] sm:$0xff] %v2885_v45  ;;  %2900 = vpow2.f32 %v2142_v46  ;;  %v1863_v36 = vmul.f32 -0.013888889, %v1719_v15  ;;  %v1447_v7 = vmul.f32 2.0, %v3950_v23  ;;  %v1877_v57 = vmul.f32 -0.013888889, %v1733_v59 }
 0x1fc   :  { %2289 = vst [vmem:[#allocation10 + $0x358] sm:$0xff] %v2887_v10  ;;  %2902 = vpow2.f32 %v2132_v12  ;;  %v2146_v24 = vmul.f32 1.442695, %v1876_v6  ;;  %v1878_v54 = vmul.f32 -0.013888889, %v1734_v21  ;;  %v1440_v37 = vmul.f32 2.0, %v934_v55 }
 0x1fd   :  { %v2120_v25 = vmul.f32 1.442695, %v1863_v36  ;;  %v1591_v62 = vsub.f32 %v1303_v22, %v1447_v7  ;;  %v1448_v42 = vmul.f32 2.0, %v3956_v48  ;;  %v2148_v5 = vmul.f32 1.442695, %v1877_v57 }
 0x1fe   :  { %v2889_v52 = vpop.eup %2888  ;;  %2904 = vpow2.f32 %v2146_v24  ;;  %v2150_v30 = vmul.f32 1.442695, %v1878_v54  ;;  %v1449_v43 = vmul.f32 2.0, %v2572_v60  ;;  %v1584_v13 = vsub.f32 %v3937_v32, %v1440_v37 }
 0x1ff   :  { %v2891_v23 = vpop.eup %2890  ;;  %2302 = vst [vmem:[#allocation10 + $0x3c0] sm:$0xff] %v2889_v52  ;;  %2906 = vpow2.f32 %v2120_v25  ;;  %v1735_v29 = vmax.f32 %v1591_v62, 0.0  ;;  %v1592_v47 = vsub.f32 %v1304_v8, %v1448_v42  ;;  %v1306_v48 = vadd.f32 %v3280_v41, %v1150_v3  ;;  %v1156_v62 = vpop.xlane.xlu1 %1155 }
 0x200   :  { %v2893_v28 = vpop.eup %2892  ;;  %2283 = vst [vmem:[#allocation10 + $0x328] sm:$0xff] %v2891_v23  ;;  %2908 = vpow2.f32 %v2148_v5  ;;  %v1593_v50 = vsub.f32 %v1305_v34, %v1449_v43  ;;  %v1307_v17 = vadd.f32 %v4134_v35, %v1150_v3  ;;  %v1728_v53 = vmax.f32 %v1584_v13, 0.0  ;;  %v733_v34 = vpop.f32.mrf.mxu0 }
 0x201   :  { %v2895_v26 = vpop.eup %2894  ;;  %2303 = vst [vmem:[#allocation10 + $0x3c8] sm:$0xff] %v2893_v28  ;;  %2910 = vpow2.f32 %v2150_v30  ;;  %v1879_v49 = vmul.f32 -0.013888889, %v1735_v29  ;;  %v1736_v4 = vmax.f32 %v1592_v47, 0.0  ;;  %v3979_v58 = vadd.f32 %v3284_v44, %v1150_v3  ;;  %v1154_v23 = vpop.xlane.xlu0 %1153 }
 0x202   :  { %2298 = vst [vmem:[#allocation10 + $0x3a0] sm:$0xff] %v2895_v26  ;;  %v1737_v32 = vmax.f32 %v1593_v50, 0.0  ;;  %v1450_v55 = vmul.f32 2.0, %v3962_v11  ;;  %v1443_v9 = vmul.f32 2.0, %v937_v20  ;;  %v1872_v31 = vmul.f32 -0.013888889, %v1728_v53  ;;  %v950_v11 = vpop.f32.mrf.mxu1  ;;  %v735_v50 = vpop.f32.mrf.mxu0 }
 0x203   :  { %v2152_v19 = vmul.f32 1.442695, %v1879_v49  ;;  %v1880_v56 = vmul.f32 -0.013888889, %v1736_v4  ;;  %v1309_v63 = vadd.f32 %v3280_v41, %v1152_v40  ;;  %v1451_v38 = vmul.f32 2.0, %v3967_v1 }
 0x204   :  { %v1881_v27 = vmul.f32 -0.013888889, %v1737_v32  ;;  %v1594_v0 = vsub.f32 %v1306_v48, %v1450_v55  ;;  %v1587_v16 = vsub.f32 %v3948_v2, %v1443_v9  ;;  %v2897_v33 = vpop.eup %2896  ;;  %v2138_v22 = vmul.f32 1.442695, %v1872_v31  ;;  %v2576_v25 = vpop.f32.mrf.mxu1 }
 0x205   :  { %2912 = vpow2.f32 %v2152_v19  ;;  %v2154_v39 = vmul.f32 1.442695, %v1880_v56  ;;  %v3987_v46 = vmul.f32 2.0, %v2575_v14  ;;  %v2899_v12 = vpop.eup %2898  ;;  %2305 = vst [vmem:[#allocation10 + $0x3d8] sm:$0xff] %v2897_v33  ;;  %v1595_v6 = vsub.f32 %v1307_v17, %v1451_v38 }
 0x206   :  { %v2156_v15 = vmul.f32 1.442695, %v1881_v27  ;;  %v1738_v60 = vmax.f32 %v1594_v0, 0.0  ;;  %v1731_v45 = vmax.f32 %v1587_v16, 0.0  ;;  %2292 = vst [vmem:[#allocation10 + $0x370] sm:$0xff] %v2899_v12  ;;  %2914 = vpow2.f32 %v2138_v22  ;;  %v953_v26 = vpop.f32.mrf.mxu1  ;;  %v737_v27 = vpop.f32.mrf.mxu0 }
 0x207   :  { %v1310_v2 = vadd.f32 %v4134_v35, %v1152_v40  ;;  %v3991_v1 = vadd.f32 %v3284_v44, %v1152_v40  ;;  %v1453_v59 = vmul.f32 2.0, %v3972_v18  ;;  %2916 = vpow2.f32 %v2154_v39 }
 0x208   :  { %v2901_v21 = vpop.eup %2900  ;;  %v1882_v8 = vmul.f32 -0.013888889, %v1738_v60  ;;  %v1875_v10 = vmul.f32 -0.013888889, %v1731_v45  ;;  %v1739_v36 = vmax.f32 %v1595_v6, 0.0  ;;  %2918 = vpow2.f32 %v2156_v15 }
 0x209   :  { %v2903_v7 = vpop.eup %2902  ;;  %2306 = vst [vmem:[#allocation10 + $0x3e0] sm:$0xff] %v2901_v21  ;;  %v1597_v24 = vsub.f32 %v1309_v63, %v1453_v59  ;;  %v1452_v57 = vmul.f32 2.0, %v950_v11  ;;  %v1454_v54 = vmul.f32 2.0, %v727_v51  ;;  %v3995_v18 = vadd.f32 %v3280_v41, %v1156_v62 }
 0x20a   :  { %2301 = vst [vmem:[#allocation10 + $0x3b8] sm:$0xff] %v2903_v7  ;;  %v2158_v37 = vmul.f32 1.442695, %v1882_v8  ;;  %v2144_v42 = vmul.f32 1.442695, %v1875_v10  ;;  %v1461_v43 = vmul.f32 2.0, %v2576_v25  ;;  %v1316_v47 = vadd.f32 %v4134_v35, %v1156_v62 }
 0x20b   :  { %v1883_v3 = vmul.f32 -0.013888889, %v1739_v36  ;;  %v2905_v20 = vpop.eup %2904  ;;  %v1741_v52 = vmax.f32 %v1597_v24, 0.0  ;;  %v1596_v5 = vsub.f32 %v3979_v58, %v1452_v57  ;;  %v1598_v30 = vsub.f32 %v1310_v2, %v1454_v54 }
 0x20c   :  { %v2907_v29 = vpop.eup %2906  ;;  %2308 = vst [vmem:[#allocation10 + $0x3f0] sm:$0xff] %v2905_v20  ;;  %2920 = vpow2.f32 %v2158_v37  ;;  %v1317_v28 = vadd.f32 %v3284_v44, %v1156_v62  ;;  %v1312_v4 = vadd.f32 %v3280_v41, %v1154_v23  ;;  %v1313_v14 = vadd.f32 %v4134_v35, %v1154_v23 }
 0x20d   :  { %v2160_v13 = vmul.f32 1.442695, %v1883_v3  ;;  %v2909_v48 = vpop.eup %2908  ;;  %2295 = vst [vmem:[#allocation10 + $0x388] sm:$0xff] %v2907_v29  ;;  %2922 = vpow2.f32 %v2144_v42  ;;  %v1885_v17 = vmul.f32 -0.013888889, %v1741_v52  ;;  %v1740_v40 = vmax.f32 %v1596_v5, 0.0 }
 0x20e   :  { %v1742_v51 = vmax.f32 %v1598_v30, 0.0  ;;  %v2911_v49 = vpop.eup %2910  ;;  %2309 = vst [vmem:[#allocation10 + $0x3f8] sm:$0xff] %v2909_v48  ;;  %v1605_v53 = vsub.f32 %v1317_v28, %v1461_v43  ;;  %v1314_v9 = vadd.f32 %v3284_v44, %v1154_v23  ;;  %v1456_v31 = vmul.f32 2.0, %v3985_v61 }
 0x20f   :  { %2924 = vpow2.f32 %v2160_v13  ;;  %2310 = vst [vmem:[#allocation10 + $0x400] sm:$0xff] %v2911_v49  ;;  %v2164_v32 = vmul.f32 1.442695, %v1885_v17  ;;  %v1884_v58 = vmul.f32 -0.013888889, %v1740_v40  ;;  %v1455_v56 = vmul.f32 2.0, %v953_v26 }
 0x210   :  { %v1886_v55 = vmul.f32 -0.013888889, %v1742_v51  ;;  %v1749_v19 = vmax.f32 %v1605_v53, 0.0  ;;  %v1457_v63 = vmul.f32 2.0, %v733_v34  ;;  %v1602_v38 = vsub.f32 %v1314_v9, %v3987_v46 }
 0x211   :  { %2926 = vpow2.f32 %v2164_v32  ;;  %v2162_v0 = vmul.f32 1.442695, %v1884_v58  ;;  %v1600_v35 = vsub.f32 %v1312_v4, %v1456_v31  ;;  %v1599_v22 = vsub.f32 %v3991_v1, %v1455_v56 }
 0x212   :  { %v2166_v16 = vmul.f32 1.442695, %v1886_v55  ;;  %v2913_v41 = vpop.eup %2912  ;;  %v1893_v33 = vmul.f32 -0.013888889, %v1749_v19  ;;  %v1601_v39 = vsub.f32 %v1313_v14, %v1457_v63  ;;  %v1746_v44 = vmax.f32 %v1602_v38, 0.0 }
 0x213   :  { %2311 = vst [vmem:[#allocation10 + $0x408] sm:$0xff] %v2913_v41  ;;  %2928 = vpow2.f32 %v2162_v0  ;;  %v1459_v11 = vmul.f32 2.0, %v735_v50  ;;  %v1460_v12 = vmul.f32 2.0, %v737_v27  ;;  %v2915_v61 = vpop.eup %2914  ;;  %v1744_v60 = vmax.f32 %v1600_v35, 0.0 }
 0x214   :  { %2930 = vpow2.f32 %v2166_v16  ;;  %v2180_v15 = vmul.f32 1.442695, %v1893_v33  ;;  %v1743_v45 = vmax.f32 %v1599_v22, 0.0  ;;  %v2917_v6 = vpop.eup %2916  ;;  %2304 = vst [vmem:[#allocation10 + $0x3d0] sm:$0xff] %v2915_v61  ;;  %v1890_v2 = vmul.f32 -0.013888889, %v1746_v44 }
 0x215   :  { %v1745_v46 = vmax.f32 %v1601_v39, 0.0  ;;  %v1603_v59 = vsub.f32 %v3995_v18, %v1459_v11  ;;  %v1604_v21 = vsub.f32 %v1316_v47, %v1460_v12  ;;  %v2919_v8 = vpop.eup %2918  ;;  %2312 = vst [vmem:[#allocation10 + $0x410] sm:$0xff] %v2917_v6  ;;  %v1888_v1 = vmul.f32 -0.013888889, %v1744_v60 }
 0x216   :  { %2932 = vpow2.f32 %v2180_v15  ;;  %v1887_v10 = vmul.f32 -0.013888889, %v1743_v45  ;;  %2313 = vst [vmem:[#allocation10 + $0x418] sm:$0xff] %v2919_v8  ;;  %v2174_v36 = vmul.f32 1.442695, %v1890_v2 }
 0x217   :  { %v1889_v34 = vmul.f32 -0.013888889, %v1745_v46  ;;  %v1747_v7 = vmax.f32 %v1603_v59, 0.0  ;;  %v1748_v24 = vmax.f32 %v1604_v21, 0.0  ;;  %v2170_v57 = vmul.f32 1.442695, %v1888_v1 }
 0x218   :  { %v2168_v54 = vmul.f32 1.442695, %v1887_v10  ;;  %2934 = vpow2.f32 %v2174_v36 }
 0x219   :  { %v2921_v25 = vpop.eup %2920  ;;  %v2172_v62 = vmul.f32 1.442695, %v1889_v34  ;;  %v1891_v37 = vmul.f32 -0.013888889, %v1747_v7  ;;  %v1892_v42 = vmul.f32 -0.013888889, %v1748_v24  ;;  %2936 = vpow2.f32 %v2170_v57 }
 0x21a   :  { %v2923_v3 = vpop.eup %2922  ;;  %2314 = vst [vmem:[#allocation10 + $0x420] sm:$0xff] %v2921_v25  ;;  %2938 = vpow2.f32 %v2168_v54 }
 0x21b   :  { %2307 = vst [vmem:[#allocation10 + $0x3e8] sm:$0xff] %v2923_v3  ;;  %v2176_v20 = vmul.f32 1.442695, %v1891_v37  ;;  %v2178_v52 = vmul.f32 1.442695, %v1892_v42  ;;  %2940 = vpow2.f32 %v2172_v62 }
 0x21c   :  { %v2925_v18 = vpop.eup %2924 }
 0x21d   :  { %2315 = vst [vmem:[#allocation10 + $0x428] sm:$0xff] %v2925_v18  ;;  %2942 = vpow2.f32 %v2176_v20 }
 0x21e   :  { %v2927_v5 = vpop.eup %2926  ;;  %2944 = vpow2.f32 %v2178_v52 }
 0x21f   :  { %2317 = vst [vmem:[#allocation10 + $0x438] sm:$0xff] %v2927_v5 }
 0x220   :  { %v2929_v30 = vpop.eup %2928 }
 0x221   :  { %v2931_v43 = vpop.eup %2930  ;;  %2316 = vst [vmem:[#allocation10 + $0x430] sm:$0xff] %v2929_v30 }
 0x222   :  { %2318 = vst [vmem:[#allocation10 + $0x440] sm:$0xff] %v2931_v43 }
 0x223   :  { %v2933_v23 = vpop.eup %2932 }
 0x224   :  { %2325 = vst [vmem:[#allocation10 + $0x478] sm:$0xff] %v2933_v23 }
 0x225   :  { %v2935_v29 = vpop.eup %2934 }
 0x226   :  { %v2937_v13 = vpop.eup %2936  ;;  %2322 = vst [vmem:[#allocation10 + $0x460] sm:$0xff] %v2935_v29 }
 0x227   :  { %v2939_v47 = vpop.eup %2938  ;;  %2320 = vst [vmem:[#allocation10 + $0x450] sm:$0xff] %v2937_v13 }
 0x228   :  { %v2941_v28 = vpop.eup %2940  ;;  %2319 = vst [vmem:[#allocation10 + $0x448] sm:$0xff] %v2939_v47 }
 0x229   :  { %2321 = vst [vmem:[#allocation10 + $0x458] sm:$0xff] %v2941_v28 }
 0x22a   :  { %v2943_v50 = vpop.eup %2942 }
 0x22b   :  { %v2945_v48 = vpop.eup %2944  ;;  %2323 = vst [vmem:[#allocation10 + $0x468] sm:$0xff] %v2943_v50 }
 0x22c   :  { %2324 = vst [vmem:[#allocation10 + $0x470] sm:$0xff] %v2945_v48 }
 0x22d   :  { %3001 = shalt.err (!%p2998_p11)
}
 0x22e   :  { %s3002_s13 = scalar_lea.hbm %s2338_s0, 18432  ;;  %s3004_s16 = scalar_lea.hbm %s4025_s5, 18432 }
 0x22f   :  { %p3003_p12 = scmp.ne.s32.totalorder %s2338_s0, %s3002_s13  ;;  %p3005_p13 = scmp.lt.s32.totalorder %s2338_s0, %s4025_s5 }
 0x230   :  { %p3006_p0 = scmp.lt.s32.totalorder %s3004_s16, %s3002_s13 }
 0x232   :  { %p3007_p1 = por %p3006_p0, %p3005_p13 }
 0x234   :  { %p3008_p2 = pnand %p3007_p1, %p3003_p12 }
 0x236   :  { %3011 = shalt.err (!%p3008_p2)
}
 0x237   :  { %s3023_s18 = smov 384   ;;  %s3024_s19 = smov 24  }
 0x238   :  { %2345 = dma.vmem_to_hbm [thread:$0]  %s2340_s9, 18432, %s2338_s0, [#allocation7], %s3023_s18, %s3023_s18, %s3024_s19  }
 0x239   :  { %3016 = dma.done.wait [#allocation7], 18432  }
 0x23a   :  { %3017 = vsyncadd [#allocation7], 4294948864 }
 0x23b   :  { %2349 = vsyncpa [#allocation6], 1 }
 0x23c   :  { %2350 = vsyncpa [#allocation9], 1 }
 0x23d   :  { %2351 = vsyncpa [#allocation7], 1 }

</bundles_post_ra>
